<compile_context>
chip_gen: v7x
topology: tpu7x:2x2x1
jax: 0.10.0
libtpu: 0.0.40
codegen_flags: <defaults>
</compile_context>

<pallas_src>
import jax
import jax.numpy as jnp
from jax.experimental import pallas as pl
from jax.experimental.pallas import tpu as pltpu

H = 256          # GatedGraphConv out_channels
L = 3            # GatedGraphConv num_layers


def _round_up(n, m):
    return ((n + m - 1) // m) * m


def _vmem_budget_bytes():
    """Generation-aware VMEM budget with ~25% headroom for compiler scratch."""
    try:
        cap = pltpu.get_tpu_info().vmem_capacity_bytes
    except Exception:
        cap = 64 << 20        # conservative (v7x physical size)
    return min((cap * 3) // 4, 100 << 20)


def _tile_footprint_bytes(tm, n_pad):
    """Conservative per-call VMEM estimate for row-tile size tm."""
    a_tile = 2 * tm * n_pad * 2          # bf16 A row tile, double-buffered
    h_full = 2 * n_pad * H * 2           # resident bf16 h (worst case 2 buffers)
    h_io = 2 * 2 * tm * H * 4            # f32 h tile in + h_new/out tile, 2 buffers each
    wts = 2 * 2 * (H * 3 * H * 2)        # Wc[i] + Whh^T (bf16), double-buffered
    interm = tm * 12 * H * 4             # ah / gi / gh / rz / n f32 temporaries
    return a_tile + h_full + h_io + wts + interm


def _select_row_tile(n_pad, budget):
    """Largest row tile in {512, 256, 128} dividing n_pad that fits the budget."""
    for tm in (512, 256, 128):
        if n_pad % tm == 0 and _tile_footprint_bytes(tm, n_pad) <= budget:
            return tm
    return 128   # smallest streaming tile; vmem_limit_bytes still enforces budget


def _gru_update_tile(a_tile, h_bf_full, h_tile, wc, whh_t, b_rz, b_in, b_hn):
    """One GGNN layer for a row block: message passing + GRUCell update (f32)."""
    # message passing + folded GGC/GRU input projection (bf16 MXU, f32 accumulate)
    ah = jnp.dot(a_tile, h_bf_full, preferred_element_type=jnp.float32)       # [TM, H]
    gi = jnp.dot(ah.astype(jnp.bfloat16), wc,
                 preferred_element_type=jnp.float32)                          # [TM, 3H]
    gh = jnp.dot(h_tile.astype(jnp.bfloat16), whh_t,
                 preferred_element_type=jnp.float32)                          # [TM, 3H]

    # GRUCell(agg, h) gates in f32 (r/z biases pre-summed in the wrapper)
    rz = jax.nn.sigmoid(gi[:, :2 * H] + gh[:, :2 * H] + b_rz)                 # [TM, 2H]
    r = rz[:, :H]
    z = rz[:, H:]
    n = jnp.tanh(gi[:, 2 * H:] + b_in + r * (gh[:, 2 * H:] + b_hn))
    return (1.0 - z) * n + z * h_tile


def ggnn_layer_kernel(a_ref, hbf_ref, h_ref, wc_ref, whh_ref,
                      b_rz_ref, b_in_ref, b_hn_ref, hout_ref):
    """One intermediate GGNN layer; writes the updated h row block."""
    hout_ref[...] = _gru_update_tile(
        a_ref[...], hbf_ref[...], h_ref[...], wc_ref[...], whh_ref[...],
        b_rz_ref[...], b_in_ref[...], b_hn_ref[...])


def ggnn_head_kernel(a_ref, hbf_ref, h_ref, wc_ref, whh_ref,
                     b_rz_ref, b_in_ref, b_hn_ref, wfc_ref, bfc_ref, out_ref):
    """Last GGNN layer fused with ReLU + Dropout(p=0) + Linear(256, 1)."""
    h_new = _gru_update_tile(
        a_ref[...], hbf_ref[...], h_ref[...], wc_ref[...], whh_ref[...],
        b_rz_ref[...], b_in_ref[...], b_hn_ref[...])
    h_new = jnp.maximum(h_new, 0.0)      # relu; dropout(p=0.0) is identity
    # Linear(256, 1) as VPU multiply + lane reduction (skip 1-column MXU matmul)
    out_ref[...] = jnp.sum(h_new * wfc_ref[...], axis=-1, keepdims=True) + bfc_ref[...]


def ggnn_critic_forward(x, edge_index, edge_weight, params):
    """Pad/densify inputs, fold weights, then run the row-tiled Pallas kernels."""
    n_nodes, f_in = x.shape
    assert f_in <= H, "GatedGraphConv requires in_channels <= out_channels"

    # pad node rows to a multiple of 128 so MXU rows / contraction are full;
    # padded rows/cols of A are zero, so padded node states never reach real nodes.
    n_pad = _round_up(max(n_nodes, 128), 128)

    x_pad = jnp.zeros((n_pad, H), jnp.float32)
    x_pad = x_pad.at[:n_nodes, :f_in].set(x.astype(jnp.float32))

    # dense bf16 adjacency A[dst, src]; scatter-add directly into bf16
    # (no f32 dense intermediate -> half the pre-kernel HBM traffic)
    src, dst = edge_index[0], edge_index[1]
    adj = jnp.zeros((n_pad, n_pad), jnp.bfloat16).at[dst, src].add(
        edge_weight.astype(jnp.bfloat16))
    # TODO(synk): optionally fp8 A (with per-graph scale) on v7x to halve the A stream.

    # fold GGC layer weights into the GRU input projection: Wc[i] = W[i] @ Wih^T
    wih_t = params["gru_w_ih"].T                                   # [H, 3H]
    wc = jnp.einsum("lij,jg->lig", params["ggc_w"], wih_t)         # [L, H, 3H]
    wc = wc.astype(jnp.bfloat16)
    whh_t = params["gru_w_hh"].T.astype(jnp.bfloat16)              # [H, 3H]

    bih, bhh = params["gru_b_ih"], params["gru_b_hh"]
    b_rz = (bih[:2 * H] + bhh[:2 * H])[None, :]                    # [1, 2H]
    b_in = bih[2 * H:][None, :]                                    # [1, H]
    b_hn = bhh[2 * H:][None, :]                                    # [1, H]

    wfc = params["fc_w"].reshape(1, H).astype(jnp.float32)         # [1, H] row
    bfc = params["fc_b"].reshape(1, 1).astype(jnp.float32)         # [1, 1]

    budget = _vmem_budget_bytes()
    tm = _select_row_tile(n_pad, budget)
    grid = (n_pad // tm,)

    # row-tiled A (pipelined DMA); h / weights / biases resident (constant index)
    a_spec = pl.BlockSpec((tm, n_pad), lambda i: (i, 0))
    hbf_spec = pl.BlockSpec((n_pad, H), lambda i: (0, 0))
    h_spec = pl.BlockSpec((tm, H), lambda i: (i, 0))
    w_spec = pl.BlockSpec((H, 3 * H), lambda i: (0, 0))
    brz_spec = pl.BlockSpec((1, 2 * H), lambda i: (0, 0))
    bh_spec = pl.BlockSpec((1, H), lambda i: (0, 0))
    wfc_spec = pl.BlockSpec((1, H), lambda i: (0, 0))
    bfc_spec = pl.BlockSpec((1, 1), lambda i: (0, 0))

    cparams = pltpu.CompilerParams(
        dimension_semantics=("parallel",),   # v7x: row blocks split across both TCs
        vmem_limit_bytes=budget)

    layer_call = pl.pallas_call(
        ggnn_layer_kernel,
        out_shape=jax.ShapeDtypeStruct((n_pad, H), jnp.float32),
        grid=grid,
        in_specs=[a_spec, hbf_spec, h_spec, w_spec, w_spec,
                  brz_spec, bh_spec, bh_spec],
        out_specs=h_spec,
        compiler_params=cparams)

    head_call = pl.pallas_call(
        ggnn_head_kernel,
        out_shape=jax.ShapeDtypeStruct((n_pad, 1), jnp.float32),
        grid=grid,
        in_specs=[a_spec, hbf_spec, h_spec, w_spec, w_spec,
                  brz_spec, bh_spec, bh_spec, wfc_spec, bfc_spec],
        out_specs=pl.BlockSpec((tm, 1), lambda i: (i, 0)),
        compiler_params=cparams)

    # f32 h carried between layers; bf16 copy fed to the A@h contraction.
    h = x_pad
    for i in range(L - 1):
        h = layer_call(adj, h.astype(jnp.bfloat16), h, wc[i], whh_t,
                       b_rz, b_in, b_hn)
    out = head_call(adj, h.astype(jnp.bfloat16), h, wc[L - 1], whh_t,
                    b_rz, b_in, b_hn, wfc, bfc)
    return out[:n_nodes]


def ggnn_critic_reference(x, edge_index, edge_weight, params):
    """Pure-JAX f32 reference of the PyTorch forward pass."""
    n_nodes, f_in = x.shape
    h = jnp.pad(x.astype(jnp.float32), ((0, 0), (0, H - f_in)))
    src, dst = edge_index[0], edge_index[1]
    adj = jnp.zeros((n_nodes, n_nodes), jnp.float32).at[dst, src].add(
        edge_weight.astype(jnp.float32))
    wih, whh = params["gru_w_ih"], params["gru_w_hh"]
    bih, bhh = params["gru_b_ih"], params["gru_b_hh"]
    for i in range(L):
        m = h @ params["ggc_w"][i]
        agg = adj @ m
        gi = agg @ wih.T + bih
        gh = h @ whh.T + bhh
        r = jax.nn.sigmoid(gi[:, :H] + gh[:, :H])
        z = jax.nn.sigmoid(gi[:, H:2 * H] + gh[:, H:2 * H])
        n = jnp.tanh(gi[:, 2 * H:] + r * gh[:, 2 * H:])
        h = (1.0 - z) * n + z * h
    h = jnp.maximum(h, 0.0)
    return h @ params["fc_w"].T + params["fc_b"]


def init_params(key):
    """Deterministic synthetic parameters matching the module's shapes."""
    ks = jax.random.split(key, 6)
    s = 1.0 / jnp.sqrt(jnp.float32(H))
    return {
        # GatedGraphConv.weight: [num_layers, out_channels, out_channels]
        "ggc_w": jax.random.uniform(ks[0], (L, H, H), jnp.float32, -s, s),
        # torch.nn.GRUCell(256, 256)
        "gru_w_ih": jax.random.uniform(ks[1], (3 * H, H), jnp.float32, -s, s),
        "gru_w_hh": jax.random.uniform(ks[2], (3 * H, H), jnp.float32, -s, s),
        "gru_b_ih": jax.random.uniform(ks[3], (3 * H,), jnp.float32, -s, s),
        "gru_b_hh": jax.random.uniform(ks[4], (3 * H,), jnp.float32, -s, s),
        # torch.nn.Linear(256, 1)
        "fc_w": jax.random.uniform(ks[5], (1, H), jnp.float32, -s, s),
        "fc_b": jnp.zeros((1,), jnp.float32),
    }


if __name__ == "__main__":
    key = jax.random.PRNGKey(0)
    k_par, k_x, k_ew = jax.random.split(key, 3)

    num_nodes = 16
    num_node_features = 8

    params = init_params(k_par)

    # small deterministic graph: directed ring + a few extra edges
    src = jnp.array(list(range(num_nodes)) + [0, 3, 7, 11], dtype=jnp.int32)
    dst = jnp.array([(i + 1) % num_nodes for i in range(num_nodes)]
                    + [8, 12, 2, 5], dtype=jnp.int32)
    edge_index = jnp.stack([src, dst], axis=0)                    # [2, E]
    edge_weight = jax.random.uniform(k_ew, (edge_index.shape[1],),
                                     jnp.float32, 0.1, 1.0)       # [E]

    x = jax.random.normal(k_x, (num_nodes, num_node_features), jnp.float32)

    out = ggnn_critic_forward(x, edge_index, edge_weight, params)
    out = jax.block_until_ready(out)
    assert out.shape == (num_nodes, 1) and out.dtype == jnp.float32
    assert bool(jnp.all(jnp.isfinite(out)))

    # loose tolerance: bf16 MXU operands (f32 accumulation) vs all-f32 reference
    ref = ggnn_critic_reference(x, edge_index, edge_weight, params)
    max_err = float(jnp.max(jnp.abs(out - ref)))
    assert max_err < 1e-1, f"kernel/reference mismatch: {max_err}"

    print("KERNEL_OK")
</pallas_src>

<mosaic_0001>
module attributes {stable_mosaic.version = 11 : i64} {
  func.func @ggnn_layer_kernel(%arg0: i32, %arg1: memref<128x128xbf16, #tpu.memory_space<vmem>>, %arg2: memref<128x256xbf16, #tpu.memory_space<vmem>>, %arg3: memref<128x256xf32, #tpu.memory_space<vmem>>, %arg4: memref<256x768xbf16, #tpu.memory_space<vmem>>, %arg5: memref<256x768xbf16, #tpu.memory_space<vmem>>, %arg6: memref<1x512xf32, #tpu.memory_space<vmem>>, %arg7: memref<1x256xf32, #tpu.memory_space<vmem>>, %arg8: memref<1x256xf32, #tpu.memory_space<vmem>>, %arg9: memref<128x256xf32, #tpu.memory_space<vmem>>) attributes {dimension_semantics = [#tpu.dimension_semantics<parallel>], iteration_bounds = array<i64: 1>, scalar_prefetch = 0 : i64, scratch_operands = 0 : i64, tpu.core_type = #tpu.core_type<tc>, window_params = [{transform_indices = @transform_0, window_bounds = array<i64: 128, 128>}, {pipeline_mode = #tpu.pipeline_mode<synchronous>, transform_indices = @transform_1, window_bounds = array<i64: 128, 256>}, {transform_indices = @transform_2, window_bounds = array<i64: 128, 256>}, {pipeline_mode = #tpu.pipeline_mode<synchronous>, transform_indices = @transform_3, window_bounds = array<i64: 256, 768>}, {pipeline_mode = #tpu.pipeline_mode<synchronous>, transform_indices = @transform_4, window_bounds = array<i64: 256, 768>}, {pipeline_mode = #tpu.pipeline_mode<synchronous>, transform_indices = @transform_5, window_bounds = array<i64: 1, 512>}, {pipeline_mode = #tpu.pipeline_mode<synchronous>, transform_indices = @transform_6, window_bounds = array<i64: 1, 256>}, {pipeline_mode = #tpu.pipeline_mode<synchronous>, transform_indices = @transform_7, window_bounds = array<i64: 1, 256>}, {transform_indices = @transform_8, window_bounds = array<i64: 128, 256>}]} {
    %c0 = arith.constant 0 : index
    %c0_0 = arith.constant 0 : index
    %0 = vector.load %arg1[%c0, %c0_0] : memref<128x128xbf16, #tpu.memory_space<vmem>>, vector<128x128xbf16>
    %c0_1 = arith.constant 0 : index
    %c0_2 = arith.constant 0 : index
    %1 = vector.load %arg2[%c0_1, %c0_2] : memref<128x256xbf16, #tpu.memory_space<vmem>>, vector<128x256xbf16>
    %c0_3 = arith.constant 0 : index
    %c0_4 = arith.constant 0 : index
    %2 = vector.load %arg3[%c0_3, %c0_4] : memref<128x256xf32, #tpu.memory_space<vmem>>, vector<128x256xf32>
    %c0_5 = arith.constant 0 : index
    %c0_6 = arith.constant 0 : index
    %3 = vector.load %arg4[%c0_5, %c0_6] : memref<256x768xbf16, #tpu.memory_space<vmem>>, vector<256x768xbf16>
    %c0_7 = arith.constant 0 : index
    %c0_8 = arith.constant 0 : index
    %4 = vector.load %arg5[%c0_7, %c0_8] : memref<256x768xbf16, #tpu.memory_space<vmem>>, vector<256x768xbf16>
    %c0_9 = arith.constant 0 : index
    %c0_10 = arith.constant 0 : index
    %5 = vector.load %arg6[%c0_9, %c0_10] : memref<1x512xf32, #tpu.memory_space<vmem>>, vector<1x512xf32>
    %c0_11 = arith.constant 0 : index
    %c0_12 = arith.constant 0 : index
    %6 = vector.load %arg7[%c0_11, %c0_12] : memref<1x256xf32, #tpu.memory_space<vmem>>, vector<1x256xf32>
    %c0_13 = arith.constant 0 : index
    %c0_14 = arith.constant 0 : index
    %7 = vector.load %arg8[%c0_13, %c0_14] : memref<1x256xf32, #tpu.memory_space<vmem>>, vector<1x256xf32>
    %cst = arith.constant dense<0.000000e+00> : vector<128x256xf32>
    %8 = tpu.matmul %0, %1, %cst {dimension_numbers = #tpu.dot_dimension_numbers<[1], [0], [0], [1], [0, 0, 1, 1], [], []>} : vector<128x128xbf16>, vector<128x256xbf16>, vector<128x256xf32> -> vector<128x256xf32>
    %9 = arith.truncf %8 : vector<128x256xf32> to vector<128x256xbf16>
    %cst_15 = arith.constant dense<0.000000e+00> : vector<128x768xf32>
    %10 = tpu.matmul %9, %3, %cst_15 {dimension_numbers = #tpu.dot_dimension_numbers<[1], [0], [0], [1], [0, 0, 1, 1], [], []>} : vector<128x256xbf16>, vector<256x768xbf16>, vector<128x768xf32> -> vector<128x768xf32>
    %11 = arith.truncf %2 : vector<128x256xf32> to vector<128x256xbf16>
    %cst_16 = arith.constant dense<0.000000e+00> : vector<128x768xf32>
    %12 = tpu.matmul %11, %4, %cst_16 {dimension_numbers = #tpu.dot_dimension_numbers<[1], [0], [0], [1], [0, 0, 1, 1], [], []>} : vector<128x256xbf16>, vector<256x768xbf16>, vector<128x768xf32> -> vector<128x768xf32>
    %13 = vector.extract_strided_slice %10 {offsets = [0, 0], sizes = [128, 512], strides = [1, 1]} : vector<128x768xf32> to vector<128x512xf32>
    %14 = vector.extract_strided_slice %12 {offsets = [0, 0], sizes = [128, 512], strides = [1, 1]} : vector<128x768xf32> to vector<128x512xf32>
    %15 = arith.addf %13, %14 : vector<128x512xf32>
    %16 = vector.broadcast %5 : vector<1x512xf32> to vector<128x512xf32>
    %17 = arith.addf %15, %16 : vector<128x512xf32>
    %18 = arith.negf %17 : vector<128x512xf32>
    %19 = math.exp %18 : vector<128x512xf32>
    %cst_17 = arith.constant 1.000000e+00 : f32
    %20 = vector.broadcast %cst_17 : f32 to vector<128x512xf32>
    %21 = arith.addf %20, %19 : vector<128x512xf32>
    %22 = arith.divf %20, %21 : vector<128x512xf32>
    %23 = vector.extract_strided_slice %22 {offsets = [0, 0], sizes = [128, 256], strides = [1, 1]} : vector<128x512xf32> to vector<128x256xf32>
    %24 = vector.extract_strided_slice %22 {offsets = [0, 256], sizes = [128, 256], strides = [1, 1]} : vector<128x512xf32> to vector<128x256xf32>
    %25 = vector.extract_strided_slice %10 {offsets = [0, 512], sizes = [128, 256], strides = [1, 1]} : vector<128x768xf32> to vector<128x256xf32>
    %26 = vector.broadcast %6 : vector<1x256xf32> to vector<128x256xf32>
    %27 = arith.addf %25, %26 : vector<128x256xf32>
    %28 = vector.extract_strided_slice %12 {offsets = [0, 512], sizes = [128, 256], strides = [1, 1]} : vector<128x768xf32> to vector<128x256xf32>
    %29 = vector.broadcast %7 : vector<1x256xf32> to vector<128x256xf32>
    %30 = arith.addf %28, %29 : vector<128x256xf32>
    %31 = arith.mulf %23, %30 : vector<128x256xf32>
    %32 = arith.addf %27, %31 : vector<128x256xf32>
    %33 = math.tanh %32 : vector<128x256xf32>
    %cst_18 = arith.constant 1.000000e+00 : f32
    %34 = vector.broadcast %cst_18 : f32 to vector<128x256xf32>
    %35 = arith.subf %34, %24 : vector<128x256xf32>
    %36 = arith.mulf %35, %33 : vector<128x256xf32>
    %37 = arith.mulf %24, %2 : vector<128x256xf32>
    %38 = arith.addf %36, %37 : vector<128x256xf32>
    %c0_19 = arith.constant 0 : index
    %c0_20 = arith.constant 0 : index
    %39 = vector.load %arg9[%c0_19, %c0_20] : memref<128x256xf32, #tpu.memory_space<vmem>>, vector<128x256xf32>
    tpu.vector_store %arg9[%c0_19, %c0_20], %38 {strides = array<i32>} : memref<128x256xf32, #tpu.memory_space<vmem>>, vector<128x256xf32>,
    return
  }
  func.func @transform_0(%arg0: i32) -> (i32, i32) {
    %c0_i32 = arith.constant 0 : i32
    %c0_i32_0 = arith.constant 0 : i32
    return %arg0, %c0_i32 : i32, i32
  }
  func.func @transform_1(%arg0: i32) -> (i32, i32) {
    %c0_i32 = arith.constant 0 : i32
    %c0_i32_0 = arith.constant 0 : i32
    %c0_i32_1 = arith.constant 0 : i32
    return %c0_i32, %c0_i32_0 : i32, i32
  }
  func.func @transform_2(%arg0: i32) -> (i32, i32) {
    %c0_i32 = arith.constant 0 : i32
    %c0_i32_0 = arith.constant 0 : i32
    return %arg0, %c0_i32 : i32, i32
  }
  func.func @transform_3(%arg0: i32) -> (i32, i32) {
    %c0_i32 = arith.constant 0 : i32
    %c0_i32_0 = arith.constant 0 : i32
    %c0_i32_1 = arith.constant 0 : i32
    return %c0_i32, %c0_i32_0 : i32, i32
  }
  func.func @transform_4(%arg0: i32) -> (i32, i32) {
    %c0_i32 = arith.constant 0 : i32
    %c0_i32_0 = arith.constant 0 : i32
    %c0_i32_1 = arith.constant 0 : i32
    return %c0_i32, %c0_i32_0 : i32, i32
  }
  func.func @transform_5(%arg0: i32) -> (i32, i32) {
    %c0_i32 = arith.constant 0 : i32
    %c0_i32_0 = arith.constant 0 : i32
    %c0_i32_1 = arith.constant 0 : i32
    return %c0_i32, %c0_i32_0 : i32, i32
  }
  func.func @transform_6(%arg0: i32) -> (i32, i32) {
    %c0_i32 = arith.constant 0 : i32
    %c0_i32_0 = arith.constant 0 : i32
    %c0_i32_1 = arith.constant 0 : i32
    return %c0_i32, %c0_i32_0 : i32, i32
  }
  func.func @transform_7(%arg0: i32) -> (i32, i32) {
    %c0_i32 = arith.constant 0 : i32
    %c0_i32_0 = arith.constant 0 : i32
    %c0_i32_1 = arith.constant 0 : i32
    return %c0_i32, %c0_i32_0 : i32, i32
  }
  func.func @transform_8(%arg0: i32) -> (i32, i32) {
    %c0_i32 = arith.constant 0 : i32
    %c0_i32_0 = arith.constant 0 : i32
    return %arg0, %c0_i32 : i32, i32
  }
}

</mosaic_0001>

<bundles_post_ra>
// kernel: tpu_custom_call.1
= control target key start
LH: loop header
LB: loop body
LE: loop exit
PB: predicated region body
PF: predicated region fallthrough
CT: control target
= control target key end

     0   :  { %13 = vsyncpa [#allocation3], 0  ;;  %s5527_s0 = inlined_call_operand.hbm [shape: bf16[128,128], index: 0, kind: input, shape index: {}]   ;;  %s5528_s1 = inlined_call_operand.hbm [shape: bf16[128,256], index: 1, kind: input, shape index: {}]   ;;  %s5529_s2 = inlined_call_operand.hbm [shape: f32[128,256], index: 2, kind: input, shape index: {}]   ;;  %s5530_s3 = inlined_call_operand.hbm [shape: bf16[256,768], index: 3, kind: input, shape index: {}]   ;;  %s5531_s4 = inlined_call_operand.hbm [shape: bf16[256,768], index: 4, kind: input, shape index: {}]   ;;  %s5532_s5 = inlined_call_operand.vmem [shape: f32[1,512], index: 5, kind: input, shape index: {}]   ;;  %s5533_s6 = inlined_call_operand.vmem [shape: f32[1,256], index: 6, kind: input, shape index: {}]   ;;  %s5534_s7 = inlined_call_operand.vmem [shape: f32[1,256], index: 7, kind: input, shape index: {}]   ;;  %s5535_s8 = inlined_call_operand.hbm [shape: f32[128,256], index: 8, kind: output, shape index: {}]  }
   0x1   :  { %14 = vsyncpa [#allocation6], 0 }
   0x2   :  { %15 = vsyncpa [#allocation9], 0 }
   0x3   :  { %16 = vsyncpa [#allocation4], 0  ;;  %s4366_s27 = smov [#allocation5]   ;;  %s4226_s9 = scalar_lea.hbm %s5528_s1, 2048 }
   0x4   :  { %s34_s28 = sshll.u32 %s4366_s27, 4  ;;  %p4227_p0 = scmp.ne.s32.totalorder %s5528_s1, %s4226_s9  ;;  %s35_s28 = int_to_ptr.vmem [resolvable:$true] %s34_s28 }
   0x5   :  { %p4230_p1 = scmp.lt.u32.totalorder %s4226_s9, %s5528_s1 }
   0x7   :  { %p4232_p2 = pnand %p4230_p1, %p4227_p0 }
   0x9   :  { %4235 = shalt.err (!%p4232_p2)
}
   0xa   :  { %s4236_s14 = scalar_lea.vmem %s35_s28, 2048  ;;  %p4241_p4 = scmp.lt.s32.totalorder %s35_s28, %s35_s28 }
   0xb   :  { %p4237_p3 = scmp.ne.s32.totalorder %s35_s28, %s4236_s14  ;;  %p4242_p5 = scmp.lt.s32.totalorder %s4236_s14, %s4236_s14 }
   0xd   :  { %p4243_p6 = por %p4242_p5, %p4241_p4 }
   0xf   :  { %p4244_p7 = pnand %p4243_p6, %p4237_p3 }
  0x11   :  { %4247 = shalt.err (!%p4244_p7)
}
  0x12   :  { %s4367_s15 = smov 128   ;;  %s4368_s16 = smov 8  }
  0x13   :  { %40 = dma.hbm_to_vmem [thread:$0]  %s5528_s1, 2048, %s35_s28, [#allocation6], %s4367_s15, %s4367_s15, %s4368_s16  }
  0x14   :  { %s4369_s19 = smov [#allocation8]   ;;  %s4248_s23 = scalar_lea.hbm %s5530_s3, 12288 }
  0x15   :  { %s58_s20 = sshll.u32 %s4369_s19, 4  ;;  %p4249_p8 = scmp.ne.s32.totalorder %s5530_s3, %s4248_s23  ;;  %s59_s20 = int_to_ptr.vmem [resolvable:$true] %s58_s20 }
  0x16   :  { %p4252_p9 = scmp.lt.u32.totalorder %s4248_s23, %s5530_s3 }
  0x18   :  { %p4254_p10 = pnand %p4252_p9, %p4249_p8 }
  0x1a   :  { %4257 = shalt.err (!%p4254_p10)
}
  0x1b   :  { %s4258_s29 = scalar_lea.vmem %s59_s20, 12288  ;;  %p4263_p12 = scmp.lt.s32.totalorder %s59_s20, %s59_s20 }
  0x1c   :  { %p4259_p11 = scmp.ne.s32.totalorder %s59_s20, %s4258_s29  ;;  %p4264_p13 = scmp.lt.s32.totalorder %s4258_s29, %s4258_s29 }
  0x1e   :  { %p4265_p0 = por %p4264_p13, %p4263_p12 }
  0x20   :  { %p4266_p1 = pnand %p4265_p0, %p4259_p11 }
  0x22   :  { %4269 = shalt.err (!%p4266_p1)
}
  0x23   :  { %s4370_s1 = smov 384   ;;  %s4371_s28 = smov 24  }
  0x24   :  { %64 = dma.hbm_to_vmem [thread:$0]  %s5530_s3, 12288, %s59_s20, [#allocation9], %s4370_s1, %s4370_s1, %s4371_s28  }
  0x25   :  { %s4372_s10 = smov [#allocation2]   ;;  %s4270_s14 = scalar_lea.hbm %s5527_s0, 1024 }
  0x26   :  { %s22_s11 = sshll.u32 %s4372_s10, 4  ;;  %p4271_p2 = scmp.ne.s32.totalorder %s5527_s0, %s4270_s14  ;;  %s23_s11 = int_to_ptr.vmem [resolvable:$true] %s22_s11 }
  0x27   :  { %p4274_p3 = scmp.lt.u32.totalorder %s4270_s14, %s5527_s0 }
  0x29   :  { %p4276_p4 = pnand %p4274_p3, %p4271_p2 }
  0x2b   :  { %4279 = shalt.err (!%p4276_p4)
}
  0x2c   :  { %s4280_s19 = scalar_lea.vmem %s23_s11, 1024  ;;  %p4285_p6 = scmp.lt.s32.totalorder %s23_s11, %s23_s11 }
  0x2d   :  { %p4281_p5 = scmp.ne.s32.totalorder %s23_s11, %s4280_s19  ;;  %p4286_p7 = scmp.lt.s32.totalorder %s4280_s19, %s4280_s19 }
  0x2f   :  { %p4287_p8 = por %p4286_p7, %p4285_p6 }
  0x31   :  { %p4288_p9 = pnand %p4287_p8, %p4281_p5 }
  0x33   :  { %4291 = shalt.err (!%p4288_p9)
}
  0x34   :  { %s4373_s3 = smov 64   ;;  %s4374_s20 = smov 4  }
  0x35   :  { %28 = dma.hbm_to_vmem [thread:$0]  %s5527_s0, 1024, %s23_s11, [#allocation3], %s4373_s3, %s4373_s3, %s4374_s20  }
  0x36   :  { %s4375_s23 = smov [#allocation7]   ;;  %s4292_s27 = scalar_lea.hbm %s5529_s2, 4096 }
  0x37   :  { %s46_s24 = sshll.u32 %s4375_s23, 4  ;;  %p4293_p10 = scmp.ne.s32.totalorder %s5529_s2, %s4292_s27  ;;  %s47_s24 = int_to_ptr.vmem [resolvable:$true] %s46_s24 }
  0x38   :  { %p4296_p11 = scmp.lt.u32.totalorder %s4292_s27, %s5529_s2 }
  0x3a   :  { %p4298_p12 = pnand %p4296_p11, %p4293_p10 }
  0x3c   :  { %4301 = shalt.err (!%p4298_p12)
}
  0x3d   :  { %s4302_s12 = scalar_lea.vmem %s47_s24, 4096  ;;  %p4307_p0 = scmp.lt.s32.totalorder %s47_s24, %s47_s24 }
  0x3e   :  { %p4303_p13 = scmp.ne.s32.totalorder %s47_s24, %s4302_s12  ;;  %p4308_p1 = scmp.lt.s32.totalorder %s4302_s12, %s4302_s12 }
  0x40   :  { %p4309_p2 = por %p4308_p1, %p4307_p0 }
  0x42   :  { %p4310_p3 = pnand %p4309_p2, %p4303_p13 }
  0x44   :  { %4313 = shalt.err (!%p4310_p3)
}
  0x45   :  { %s4376_s0 = smov 256   ;;  %s4377_s11 = smov 16  }
  0x46   :  { %52 = dma.hbm_to_vmem [thread:$0]  %s5529_s2, 4096, %s47_s24, [#allocation6], %s4376_s0, %s4376_s0, %s4377_s11  }
  0x47   :  { %s4378_s15 = smov [#allocation10]   ;;  %s4314_s19 = scalar_lea.hbm %s5531_s4, 12288 }
  0x48   :  { %s70_s16 = sshll.u32 %s4378_s15, 4  ;;  %p4315_p4 = scmp.ne.s32.totalorder %s5531_s4, %s4314_s19  ;;  %s71_s16 = int_to_ptr.vmem [resolvable:$true] %s70_s16 }
  0x49   :  { %p4318_p5 = scmp.lt.u32.totalorder %s4314_s19, %s5531_s4 }
  0x4b   :  { %p4320_p6 = pnand %p4318_p5, %p4315_p4 }
  0x4d   :  { %4323 = shalt.err (!%p4320_p6)
}
  0x4e   :  { %s4324_s23 = scalar_lea.vmem %s71_s16, 12288  ;;  %p4329_p8 = scmp.lt.s32.totalorder %s71_s16, %s71_s16 }
  0x4f   :  { %p4325_p7 = scmp.ne.s32.totalorder %s71_s16, %s4324_s23  ;;  %p4330_p9 = scmp.lt.s32.totalorder %s4324_s23, %s4324_s23 }
  0x51   :  { %p4331_p10 = por %p4330_p9, %p4329_p8 }
  0x53   :  { %p4332_p11 = pnand %p4331_p10, %p4325_p7 }
  0x55   :  { %4335 = shalt.err (!%p4332_p11)
}
  0x56   :  { %76 = dma.hbm_to_vmem [thread:$0]  %s5531_s4, 12288, %s71_s16, [#allocation9], %s4370_s1, %s4370_s1, %s4371_s28  }
  0x57   :  { %4358 = dma.done.wait [#allocation3], 1024  }
  0x58   :  { %4359 = vsyncadd [#allocation3], 4294966272 }
  0x59   :  { %4360 = dma.done.wait [#allocation6], 6144  }
  0x5a   :  { %4361 = vsyncadd [#allocation6], 4294961152 }
  0x5b   :  { %4362 = dma.done.wait [#allocation9], 24576  }
  0x5c   :  { %4363 = vsyncadd [#allocation9], 4294942720  ;;  %v4379_v0 = vmov 0   ;;  %v3554_v1 = vld [vmem:[#allocation5 + $0x4] ss:$8 sps:$4 sm:$0xff]   ;;  %v3580_v43 = vld [vmem:[#allocation2 + $0x10] sm:$0xff]  }
  0x5d   :  { %518 = vmatprep.mubr.bf16.mxu0 %v4379_v0  ;;  %v3556_v2 = vld [vmem:[#allocation5] ss:$8 sps:$4 sm:$0xff]   ;;  %486 = vmatprep.subr.bf16.mxu0 %v3554_v1  ;;  %v3557_v3 = vld [vmem:[#allocation5 + $0x14] ss:$8 sps:$4 sm:$0xff]   ;;  %v3559_v4 = vld [vmem:[#allocation5 + $0x10] ss:$8 sps:$4 sm:$0xff]  }
  0x5e   :  { %487 = vmatpush1.bf16.msra.mxu0 %v3556_v2  ;;  %v3560_v5 = vld [vmem:[#allocation5 + $0x24] ss:$8 sps:$4 sm:$0xff]   ;;  %v3562_v6 = vld [vmem:[#allocation5 + $0x20] ss:$8 sps:$4 sm:$0xff]   ;;  %v3563_v7 = vld [vmem:[#allocation5 + $0x34] ss:$8 sps:$4 sm:$0xff]  }
  0x5f   :  { %488 = vmatprep.subr.bf16.mxu0 %v3557_v3  ;;  %v3565_v8 = vld [vmem:[#allocation5 + $0x30] ss:$8 sps:$4 sm:$0xff]   ;;  %v3566_v9 = vld [vmem:[#allocation5 + $0x44] ss:$8 sps:$4 sm:$0xff]   ;;  %v3568_v10 = vld [vmem:[#allocation5 + $0x40] ss:$8 sps:$4 sm:$0xff]  }
  0x60   :  { %v3569_v11 = vld [vmem:[#allocation5 + $0x54] ss:$8 sps:$4 sm:$0xff]   ;;  %v3571_v12 = vld [vmem:[#allocation5 + $0x50] ss:$8 sps:$4 sm:$0xff]   ;;  %v3572_v15 = vld [vmem:[#allocation5 + $0x64] ss:$8 sps:$4 sm:$0xff]  }
  0x61   :  { %v3586_v13 = vld [vmem:[#allocation8 + $0x4] ss:$24 sps:$4 sm:$0xff]   ;;  %v3588_v14 = vld [vmem:[#allocation8] ss:$24 sps:$4 sm:$0xff]   ;;  %v3592_v16 = vld [vmem:[#allocation8 + $0x34] ss:$24 sps:$4 sm:$0xff]  }
  0x62   :  { %489 = vmatpush1.bf16.msra.mxu0 %v3559_v4  ;;  %1095 = vmatprep.subr.bf16.mxu1 %v3586_v13  ;;  %v3594_v17 = vld [vmem:[#allocation8 + $0x30] ss:$24 sps:$4 sm:$0xff]   ;;  %v3575_v19 = vld [vmem:[#allocation5 + $0x74] ss:$8 sps:$4 sm:$0xff]   ;;  %v3600_v21 = vld [vmem:[#allocation8 + $0x60] ss:$24 sps:$4 sm:$0xff]  }
  0x63   :  { %490 = vmatprep.subr.bf16.mxu0 %v3560_v5  ;;  %1096 = vmatpush1.bf16.msra.mxu1 %v3588_v14  ;;  %v3574_v18 = vld [vmem:[#allocation5 + $0x60] ss:$8 sps:$4 sm:$0xff]   ;;  %v3598_v20 = vld [vmem:[#allocation8 + $0x64] ss:$24 sps:$4 sm:$0xff]   ;;  %v3577_v22 = vld [vmem:[#allocation5 + $0x70] ss:$8 sps:$4 sm:$0xff]  }
  0x64   :  { %1097 = vmatprep.subr.bf16.mxu1 %v3592_v16  ;;  %v3604_v23 = vld [vmem:[#allocation8 + $0x94] ss:$24 sps:$4 sm:$0xff]   ;;  %v3578_v25 = vld [vmem:[#allocation2] sm:$0xff]   ;;  %v3606_v26 = vld [vmem:[#allocation8 + $0x90] ss:$24 sps:$4 sm:$0xff]  }
  0x65   :  { %v3591_v24 = vld [vmem:[#allocation8 + $0xc] ss:$24 sps:$4 sm:$0xff]   ;;  %v3589_v27 = vld [vmem:[#allocation8 + $0x8] ss:$24 sps:$4 sm:$0xff]   ;;  %v3597_v28 = vld [vmem:[#allocation8 + $0x3c] ss:$24 sps:$4 sm:$0xff]  }
  0x66   :  { %491 = vmatpush1.bf16.msra.mxu0 %v3562_v6  ;;  %v3610_v29 = vld [vmem:[#allocation8 + $0xc4] ss:$24 sps:$4 sm:$0xff]   ;;  %v3612_v30 = vld [vmem:[#allocation8 + $0xc0] ss:$24 sps:$4 sm:$0xff]   ;;  %v3616_v32 = vld [vmem:[#allocation8 + $0xf4] ss:$24 sps:$4 sm:$0xff]  }
  0x67   :  { %492 = vmatprep.subr.bf16.mxu0 %v3563_v7  ;;  %1098 = vmatpush1.bf16.msra.mxu1 %v3594_v17  ;;  %v3595_v31 = vld [vmem:[#allocation8 + $0x38] ss:$24 sps:$4 sm:$0xff]   ;;  %v3603_v33 = vld [vmem:[#allocation8 + $0x6c] ss:$24 sps:$4 sm:$0xff]   ;;  %v3601_v36 = vld [vmem:[#allocation8 + $0x68] ss:$24 sps:$4 sm:$0xff]  }
  0x68   :  { %1099 = vmatprep.subr.bf16.mxu1 %v3598_v20  ;;  %v3579_v34 = vld [vmem:[#allocation2 + $0x8] sm:$0xff]   ;;  %v3609_v37 = vld [vmem:[#allocation8 + $0x9c] ss:$24 sps:$4 sm:$0xff]   ;;  %v3624_v39 = vld [vmem:[#allocation8 + $0x120] ss:$24 sps:$4 sm:$0xff]  }
  0x69   :  { %v3618_v35 = vld [vmem:[#allocation8 + $0xf0] ss:$24 sps:$4 sm:$0xff]   ;;  %v3622_v38 = vld [vmem:[#allocation8 + $0x124] ss:$24 sps:$4 sm:$0xff]   ;;  %v3628_v41 = vld [vmem:[#allocation8 + $0x154] ss:$24 sps:$4 sm:$0xff]  }
  0x6a   :  { %493 = vmatpush1.bf16.msra.mxu0 %v3565_v8  ;;  %v3607_v40 = vld [vmem:[#allocation8 + $0x98] ss:$24 sps:$4 sm:$0xff]   ;;  %v3615_v42 = vld [vmem:[#allocation8 + $0xcc] ss:$24 sps:$4 sm:$0xff]   ;;  %v3613_v45 = vld [vmem:[#allocation8 + $0xc8] ss:$24 sps:$4 sm:$0xff]  }
  0x6b   :  { %494 = vmatprep.subr.bf16.mxu0 %v3566_v9  ;;  %1100 = vmatpush1.bf16.msra.mxu1 %v3600_v21  ;;  %v3630_v44 = vld [vmem:[#allocation8 + $0x150] ss:$24 sps:$4 sm:$0xff]   ;;  %v3621_v46 = vld [vmem:[#allocation8 + $0xfc] ss:$24 sps:$4 sm:$0xff]   ;;  %v3636_v48 = vld [vmem:[#allocation8 + $0x180] ss:$24 sps:$4 sm:$0xff]  }
  0x6c   :  { %1101 = vmatprep.subr.bf16.mxu1 %v3604_v23  ;;  %v3634_v47 = vld [vmem:[#allocation8 + $0x184] ss:$24 sps:$4 sm:$0xff]   ;;  %v3619_v49 = vld [vmem:[#allocation8 + $0xf8] ss:$24 sps:$4 sm:$0xff]   ;;  %v3640_v50 = vld [vmem:[#allocation8 + $0x1b4] ss:$24 sps:$4 sm:$0xff]  }
  0x6d   :  { %v3627_v51 = vld [vmem:[#allocation8 + $0x12c] ss:$24 sps:$4 sm:$0xff]   ;;  %v3581_v52 = vld [vmem:[#allocation2 + $0x18] sm:$0xff]   ;;  %v3642_v53 = vld [vmem:[#allocation8 + $0x1b0] ss:$24 sps:$4 sm:$0xff]  }
  0x6e   :  { %495 = vmatpush1.bf16.msra.mxu0 %v3568_v10  ;;  %v3625_v54 = vld [vmem:[#allocation8 + $0x128] ss:$24 sps:$4 sm:$0xff]   ;;  %v3633_v55 = vld [vmem:[#allocation8 + $0x15c] ss:$24 sps:$4 sm:$0xff]   ;;  %v3631_v57 = vld [vmem:[#allocation8 + $0x158] ss:$24 sps:$4 sm:$0xff]  }
  0x6f   :  { %496 = vmatprep.subr.bf16.mxu0 %v3569_v11  ;;  %1102 = vmatpush1.bf16.msra.mxu1 %v3606_v26  ;;  %v3646_v56 = vld [vmem:[#allocation8 + $0x1e4] ss:$24 sps:$4 sm:$0xff]   ;;  %v3648_v59 = vld [vmem:[#allocation8 + $0x1e0] ss:$24 sps:$4 sm:$0xff]   ;;  %v3652_v60 = vld [vmem:[#allocation8 + $0x214] ss:$24 sps:$4 sm:$0xff]  }
  0x70   :  { %1103 = vmatprep.subr.bf16.mxu1 %v3610_v29  ;;  %v3639_v58 = vld [vmem:[#allocation8 + $0x18c] ss:$24 sps:$4 sm:$0xff]   ;;  %v3654_v62 = vld [vmem:[#allocation8 + $0x210] ss:$24 sps:$4 sm:$0xff]   ;;  %v3645_v1 = vld [vmem:[#allocation8 + $0x1bc] ss:$24 sps:$4 sm:$0xff]  }
  0x71   :  { %v3582_v61 = vld [vmem:[#allocation2 + $0x20] sm:$0xff]   ;;  %v3643_v4 = vld [vmem:[#allocation8 + $0x1b8] ss:$24 sps:$4 sm:$0xff]   ;;  %v3664_v5 = vld [vmem:[#allocation8 + $0x274] ss:$24 sps:$4 sm:$0xff]  }
  0x72   :  { %497 = vmatpush1.bf16.msra.mxu0 %v3571_v12  ;;  %v3637_v63 = vld [vmem:[#allocation8 + $0x188] ss:$24 sps:$4 sm:$0xff]   ;;  %v3658_v2 = vld [vmem:[#allocation8 + $0x244] ss:$24 sps:$4 sm:$0xff]   ;;  %v3655_v13 = vld [vmem:[#allocation8 + $0x218] ss:$24 sps:$4 sm:$0xff]  }
  0x73   :  { %498 = vmatprep.subr.bf16.mxu0 %v3572_v15  ;;  %1104 = vmatpush1.bf16.msra.mxu1 %v3612_v30  ;;  %v3660_v3 = vld [vmem:[#allocation8 + $0x240] ss:$24 sps:$4 sm:$0xff]   ;;  %v3651_v6 = vld [vmem:[#allocation8 + $0x1ec] ss:$24 sps:$4 sm:$0xff]   ;;  %v3666_v8 = vld [vmem:[#allocation8 + $0x270] ss:$24 sps:$4 sm:$0xff]  }
  0x74   :  { %1105 = vmatprep.subr.bf16.mxu1 %v3616_v32  ;;  %v3583_v7 = vld [vmem:[#allocation2 + $0x28] sm:$0xff]   ;;  %v3657_v10 = vld [vmem:[#allocation8 + $0x21c] ss:$24 sps:$4 sm:$0xff]   ;;  %v3672_v12 = vld [vmem:[#allocation8 + $0x2a0] ss:$24 sps:$4 sm:$0xff]  }
  0x75   :  { %v3649_v9 = vld [vmem:[#allocation8 + $0x1e8] ss:$24 sps:$4 sm:$0xff]   ;;  %v3670_v11 = vld [vmem:[#allocation8 + $0x2a4] ss:$24 sps:$4 sm:$0xff]   ;;  %v3584_v15 = vld [vmem:[#allocation2 + $0x30] sm:$0xff]  }
  0x76   :  { %499 = vmatpush1.bf16.msra.mxu0 %v3574_v18  ;;  %v3663_v14 = vld [vmem:[#allocation8 + $0x24c] ss:$24 sps:$4 sm:$0xff]   ;;  %v3661_v16 = vld [vmem:[#allocation8 + $0x248] ss:$24 sps:$4 sm:$0xff]   ;;  %v3669_v17 = vld [vmem:[#allocation8 + $0x27c] ss:$24 sps:$4 sm:$0xff]  }
  0x77   :  { %500 = vmatprep.subr.bf16.mxu0 %v3575_v19  ;;  %1106 = vmatpush1.bf16.msra.mxu1 %v3618_v35  ;;  %v3667_v18 = vld [vmem:[#allocation8 + $0x278] ss:$24 sps:$4 sm:$0xff]   ;;  %v3675_v19 = vld [vmem:[#allocation8 + $0x2ac] ss:$24 sps:$4 sm:$0xff]   ;;  %v3673_v21 = vld [vmem:[#allocation8 + $0x2a8] ss:$24 sps:$4 sm:$0xff]  }
  0x78   :  { %1107 = vmatprep.subr.bf16.mxu1 %v3622_v38  ;;  %v3585_v20 = vld [vmem:[#allocation2 + $0x38] sm:$0xff]   ;;  %v3684_v26 = vld [vmem:[#allocation8 + $0x14] ss:$24 sps:$4 sm:$0xff]  }
  0x79   :  { %v3681_v23 = vld [vmem:[#allocation8 + $0x2dc] ss:$24 sps:$4 sm:$0xff]   ;;  %v3688_v38 = vld [vmem:[#allocation8 + $0x40] ss:$24 sps:$4 sm:$0xff]  }
  0x7a   :  { %501 = vmatpush1.bf16.msra.mxu0 %v3577_v22  ;;  %v3676_v22 = vld [vmem:[#allocation8 + $0x2d4] ss:$24 sps:$4 sm:$0xff]   ;;  %v3690_v35 = vld [vmem:[#allocation8 + $0x44] ss:$24 sps:$4 sm:$0xff]  }
  0x7b   :  { %1208 = vmatprep.subr.bf16.mxu0 %v3591_v24  ;;  %1108 = vmatpush1.bf16.msra.mxu1 %v3624_v39  ;;  %v3678_v24 = vld [vmem:[#allocation8 + $0x2d0] ss:$24 sps:$4 sm:$0xff]  }
  0x7c   :  { %1109 = vmatprep.subr.bf16.mxu1 %v3628_v41  ;;  %v3691_v39 = vld [vmem:[#allocation10 + $0x38] ss:$24 sps:$4 sm:$0xff]   ;;  %v3696_v41 = vld [vmem:[#allocation8 + $0x74] ss:$24 sps:$4 sm:$0xff]  }
  0x7d   :  { %519 = vmatmul.mubr.bf16.vlgmr.msra.gmra.mrb[0].mxu0 %v3578_v25  ;;  %v3679_v25 = vld [vmem:[#allocation8 + $0x2d8] ss:$24 sps:$4 sm:$0xff]  }
  0x7e   :  { %528 = vmatprep.mubr.bf16.mxu0 %v4379_v0  ;;  %1209 = vmatpush1.bf16.msra.mxu0 %v3589_v27  ;;  %v3687_v27 = vld [vmem:[#allocation10 + $0xc] ss:$24 sps:$4 sm:$0xff]  }
  0x7f   :  { %1210 = vmatprep.subr.bf16.mxu0 %v3597_v28  ;;  %1110 = vmatpush1.bf16.msra.mxu1 %v3630_v44 }
  0x80   :  { %1111 = vmatprep.subr.bf16.mxu1 %v3634_v47  ;;  %v3694_v47 = vld [vmem:[#allocation8 + $0x70] ss:$24 sps:$4 sm:$0xff]  }
  0x82   :  { %1211 = vmatpush1.bf16.msra.mxu0 %v3595_v31 }
  0x83   :  { %1212 = vmatprep.subr.bf16.mxu0 %v3603_v33  ;;  %1112 = vmatpush1.bf16.msra.mxu1 %v3636_v48  ;;  %v3682_v33 = vld [vmem:[#allocation8 + $0x10] ss:$24 sps:$4 sm:$0xff]  }
  0x84   :  { %1113 = vmatprep.subr.bf16.mxu1 %v3640_v50  ;;  %v3697_v48 = vld [vmem:[#allocation10 + $0x68] ss:$24 sps:$4 sm:$0xff]   ;;  %v3705_v50 = vld [vmem:[#allocation10 + $0x9c] ss:$24 sps:$4 sm:$0xff]  }
  0x85   :  { %529 = vmatmul.mubr.bf16.gmra.mrb[4].mxu0 %v3579_v34  ;;  %v3685_v34 = vld [vmem:[#allocation10 + $0x8] ss:$24 sps:$4 sm:$0xff]  }
  0x86   :  { %538 = vmatprep.mubr.bf16.mxu0 %v4379_v0  ;;  %1213 = vmatpush1.bf16.msra.mxu0 %v3601_v36  ;;  %v3693_v36 = vld [vmem:[#allocation10 + $0x3c] ss:$24 sps:$4 sm:$0xff]  }
  0x87   :  { %1214 = vmatprep.subr.bf16.mxu0 %v3609_v37  ;;  %1114 = vmatpush1.bf16.msra.mxu1 %v3642_v53  ;;  %v3703_v53 = vld [vmem:[#allocation10 + $0x98] ss:$24 sps:$4 sm:$0xff]  }
  0x88   :  { %1115 = vmatprep.subr.bf16.mxu1 %v3646_v56  ;;  %v3711_v56 = vld [vmem:[#allocation10 + $0xcc] ss:$24 sps:$4 sm:$0xff]  }
  0x8a   :  { %1215 = vmatpush1.bf16.msra.mxu0 %v3607_v40 }
  0x8b   :  { %1216 = vmatprep.subr.bf16.mxu0 %v3615_v42  ;;  %1116 = vmatpush1.bf16.msra.mxu1 %v3648_v59  ;;  %v3699_v42 = vld [vmem:[#allocation10 + $0x6c] ss:$24 sps:$4 sm:$0xff]  }
  0x8c   :  { %1117 = vmatprep.subr.bf16.mxu1 %v3652_v60 }
  0x8d   :  { %539 = vmatmul.mubr.bf16.gmra.mrb[8].mxu0 %v3580_v43 }
  0x8e   :  { %548 = vmatprep.mubr.bf16.mxu0 %v4379_v0  ;;  %1217 = vmatpush1.bf16.msra.mxu0 %v3613_v45 }
  0x8f   :  { %1218 = vmatprep.subr.bf16.mxu0 %v3621_v46  ;;  %1118 = vmatpush1.bf16.msra.mxu1 %v3654_v62  ;;  %v3709_v62 = vld [vmem:[#allocation10 + $0xc8] ss:$24 sps:$4 sm:$0xff]  }
  0x90   :  { %1119 = vmatprep.subr.bf16.mxu1 %v3658_v2 }
  0x92   :  { %1219 = vmatpush1.bf16.msra.mxu0 %v3619_v49  ;;  %v3702_v49 = vld [vmem:[#allocation8 + $0xa4] ss:$24 sps:$4 sm:$0xff]  }
  0x93   :  { %1220 = vmatprep.subr.bf16.mxu0 %v3627_v51  ;;  %1120 = vmatpush1.bf16.msra.mxu1 %v3660_v3  ;;  %v3712_v3 = vld [vmem:[#allocation8 + $0x100] ss:$24 sps:$4 sm:$0xff]  }
  0x94   :  { %1121 = vmatprep.subr.bf16.mxu1 %v3664_v5 }
  0x95   :  { %549 = vmatmul.mubr.bf16.gmra.mrb[12].mxu0 %v3581_v52  ;;  %v3700_v52 = vld [vmem:[#allocation8 + $0xa0] ss:$24 sps:$4 sm:$0xff]  }
  0x96   :  { %558 = vmatprep.mubr.bf16.mxu0 %v4379_v0  ;;  %1221 = vmatpush1.bf16.msra.mxu0 %v3625_v54 }
  0x97   :  { %1222 = vmatprep.subr.bf16.mxu0 %v3633_v55  ;;  %1122 = vmatpush1.bf16.msra.mxu1 %v3666_v8  ;;  %v3708_v55 = vld [vmem:[#allocation8 + $0xd4] ss:$24 sps:$4 sm:$0xff]  }
  0x98   :  { %1123 = vmatprep.subr.bf16.mxu1 %v3670_v11 }
  0x9a   :  { %1223 = vmatpush1.bf16.msra.mxu0 %v3631_v57 }
  0x9b   :  { %1224 = vmatprep.subr.bf16.mxu0 %v3639_v58  ;;  %1124 = vmatpush1.bf16.msra.mxu1 %v3672_v12  ;;  %v3718_v12 = vld [vmem:[#allocation8 + $0x130] ss:$24 sps:$4 sm:$0xff]  }
  0x9c   :  { %1125 = vmatprep.subr.bf16.mxu1 %v3676_v22 }
  0x9d   :  { %559 = vmatmul.mubr.bf16.gmra.mrb[16].mxu0 %v3582_v61  ;;  %v3706_v61 = vld [vmem:[#allocation8 + $0xd0] ss:$24 sps:$4 sm:$0xff]  }
  0x9e   :  { %568 = vmatprep.mubr.bf16.mxu0 %v4379_v0  ;;  %1225 = vmatpush1.bf16.msra.mxu0 %v3637_v63  ;;  %v3714_v63 = vld [vmem:[#allocation8 + $0x104] ss:$24 sps:$4 sm:$0xff]  }
  0x9f   :  { %1226 = vmatprep.subr.bf16.mxu0 %v3645_v1  ;;  %1126 = vmatpush1.bf16.msra.mxu1 %v3678_v24  ;;  %v3717_v1 = vld [vmem:[#allocation10 + $0xfc] ss:$24 sps:$4 sm:$0xff]  }
  0xa0   :  { %1321 = vmatprep.subr.bf16.mxu1 %v3684_v26  ;;  %v3730_v26 = vld [vmem:[#allocation8 + $0x190] ss:$24 sps:$4 sm:$0xff]  }
  0xa2   :  { %1227 = vmatpush1.bf16.msra.mxu0 %v3643_v4  ;;  %v3715_v4 = vld [vmem:[#allocation10 + $0xf8] ss:$24 sps:$4 sm:$0xff]  }
  0xa3   :  { %1228 = vmatprep.subr.bf16.mxu0 %v3651_v6  ;;  %v3720_v6 = vld [vmem:[#allocation8 + $0x134] ss:$24 sps:$4 sm:$0xff]  }
  0xa5   :  { %569 = vmatmul.mubr.bf16.gmra.mrb[20].mxu0 %v3583_v7  ;;  %v3723_v7 = vld [vmem:[#allocation10 + $0x12c] ss:$24 sps:$4 sm:$0xff]  }
  0xa6   :  { %578 = vmatprep.mubr.bf16.mxu0 %v4379_v0  ;;  %1229 = vmatpush1.bf16.msra.mxu0 %v3649_v9 }
  0xa7   :  { %1230 = vmatprep.subr.bf16.mxu0 %v3657_v10 }
  0xaa   :  { %1231 = vmatpush1.bf16.msra.mxu0 %v3655_v13  ;;  %v3721_v13 = vld [vmem:[#allocation10 + $0x128] ss:$24 sps:$4 sm:$0xff]  }
  0xab   :  { %1232 = vmatprep.subr.bf16.mxu0 %v3663_v14  ;;  %v3726_v14 = vld [vmem:[#allocation8 + $0x164] ss:$24 sps:$4 sm:$0xff]  }
  0xad   :  { %579 = vmatmul.mubr.bf16.gmra.mrb[24].mxu0 %v3584_v15  ;;  %v3729_v15 = vld [vmem:[#allocation10 + $0x15c] ss:$24 sps:$4 sm:$0xff]  }
  0xae   :  { %588 = vmatprep.mubr.bf16.mxu0 %v4379_v0  ;;  %1233 = vmatpush1.bf16.msra.mxu0 %v3661_v16 }
  0xaf   :  { %1234 = vmatprep.subr.bf16.mxu0 %v3669_v17  ;;  %v3724_v17 = vld [vmem:[#allocation8 + $0x160] ss:$24 sps:$4 sm:$0xff]  }
  0xb2   :  { %1235 = vmatpush1.bf16.msra.mxu0 %v3667_v18  ;;  %v3727_v18 = vld [vmem:[#allocation10 + $0x158] ss:$24 sps:$4 sm:$0xff]  }
  0xb3   :  { %1236 = vmatprep.subr.bf16.mxu0 %v3675_v19 }
  0xb5   :  { %589 = vmatmul.mubr.bf16.gmra.mrb[28].mxu0 %v3585_v20  ;;  %v3732_v20 = vld [vmem:[#allocation8 + $0x194] ss:$24 sps:$4 sm:$0xff]  }
  0xb6   :  { %1237 = vmatpush1.bf16.msra.mxu0 %v3673_v21  ;;  %v3735_v21 = vld [vmem:[#allocation10 + $0x18c] ss:$24 sps:$4 sm:$0xff]  }
  0xb7   :  { %1238 = vmatprep.subr.bf16.mxu0 %v3681_v23 }
  0xba   :  { %1239 = vmatpush1.bf16.msra.mxu0 %v3679_v25 }
  0xbb   :  { %2043 = vmatprep.subr.bf16.mxu0 %v3687_v27  ;;  %v3733_v27 = vld [vmem:[#allocation10 + $0x188] ss:$24 sps:$4 sm:$0xff]  }
 0x150   :  { %v520_v0 = vpop.f32.mrb[0].mxu0 }
 0x151   :  { %v522_v28 = vpop.f32.mrb[1].mxu0 }
 0x152   :  { %v524_v29 = vpop.f32.mrb[2].mxu0 }
 0x153   :  { %v4503_v30 = vpack.c.bf16 %v524_v29, %v520_v0  ;;  %v526_v31 = vpop.f32.mrb[3].mxu0  ;;  %v3738_v0 = vld [vmem:[#allocation8 + $0x1c4] ss:$24 sps:$4 sm:$0xff]  }
 0x154   :  { %v4505_v32 = vpack.c.bf16 %v526_v31, %v522_v28  ;;  %v3741_v28 = vld [vmem:[#allocation10 + $0x1bc] ss:$24 sps:$4 sm:$0xff]   ;;  %v3736_v31 = vld [vmem:[#allocation8 + $0x1c0] ss:$24 sps:$4 sm:$0xff]  }
 0x156   :  { %1127 = vmatprep.mubr.bf16.mxu1 %v4505_v32  ;;  %1240 = vmatprep.mubr.bf16.mxu0 %v4505_v32 }
 0x157   :  { %1128 = vmatmul.mubr.bf16.vlgmr.msra.gmra.mrb[0].mxu1 %v4503_v30  ;;  %1241 = vmatmul.mubr.bf16.vlgmr.msra.gmra.mrb[32].mxu0 %v4503_v30 }
 0x158   :  { %1322 = vmatpush1.bf16.msra.mxu1 %v3682_v33  ;;  %v530_v37 = vpop.f32.mrb[4].mxu0  ;;  %2044 = vmatpush1.bf16.msra.mxu0 %v3685_v34  ;;  %v3739_v33 = vld [vmem:[#allocation10 + $0x1b8] ss:$24 sps:$4 sm:$0xff]  }
 0x159   :  { %v532_v40 = vpop.f32.mrb[5].mxu0  ;;  %1323 = vmatprep.subr.bf16.mxu1 %v3690_v35  ;;  %2045 = vmatprep.subr.bf16.mxu0 %v3693_v36  ;;  %v3744_v35 = vld [vmem:[#allocation8 + $0x1f4] ss:$24 sps:$4 sm:$0xff]  }
 0x15a   :  { %v534_v43 = vpop.f32.mrb[6].mxu0  ;;  %v3747_v36 = vld [vmem:[#allocation10 + $0x1ec] ss:$24 sps:$4 sm:$0xff]  }
 0x15b   :  { %v4511_v44 = vpack.c.bf16 %v534_v43, %v530_v37  ;;  %v536_v45 = vpop.f32.mrb[7].mxu0  ;;  %v3750_v43 = vld [vmem:[#allocation8 + $0x224] ss:$24 sps:$4 sm:$0xff]  }
 0x15c   :  { %v4513_v46 = vpack.c.bf16 %v536_v45, %v532_v40  ;;  %1324 = vmatpush1.bf16.msra.mxu1 %v3688_v38  ;;  %2046 = vmatpush1.bf16.msra.mxu0 %v3691_v39  ;;  %v3753_v45 = vld [vmem:[#allocation10 + $0x21c] ss:$24 sps:$4 sm:$0xff]  }
 0x15d   :  { %1325 = vmatprep.subr.bf16.mxu1 %v3696_v41  ;;  %2047 = vmatprep.subr.bf16.mxu0 %v3699_v42  ;;  %v3742_v41 = vld [vmem:[#allocation8 + $0x1f0] ss:$24 sps:$4 sm:$0xff]  }
 0x15e   :  { %1137 = vmatprep.mubr.bf16.mxu1 %v4513_v46  ;;  %1250 = vmatprep.mubr.bf16.mxu0 %v4513_v46  ;;  %v3745_v42 = vld [vmem:[#allocation10 + $0x1e8] ss:$24 sps:$4 sm:$0xff]  }
 0x15f   :  { %1138 = vmatmul.mubr.bf16.gmra.mrb[4].mxu1 %v4511_v44  ;;  %1251 = vmatmul.mubr.bf16.gmra.mrb[36].mxu0 %v4511_v44 }
 0x160   :  { %1326 = vmatpush1.bf16.msra.mxu1 %v3694_v47  ;;  %v540_v51 = vpop.f32.mrb[8].mxu0  ;;  %2048 = vmatpush1.bf16.msra.mxu0 %v3697_v48  ;;  %v3748_v48 = vld [vmem:[#allocation8 + $0x220] ss:$24 sps:$4 sm:$0xff]  }
 0x161   :  { %v542_v54 = vpop.f32.mrb[9].mxu0  ;;  %1327 = vmatprep.subr.bf16.mxu1 %v3702_v49  ;;  %2049 = vmatprep.subr.bf16.mxu0 %v3705_v50  ;;  %v3751_v49 = vld [vmem:[#allocation10 + $0x218] ss:$24 sps:$4 sm:$0xff]  }
 0x162   :  { %v544_v57 = vpop.f32.mrb[10].mxu0 }
 0x163   :  { %v4519_v58 = vpack.c.bf16 %v544_v57, %v540_v51  ;;  %v546_v59 = vpop.f32.mrb[11].mxu0  ;;  %v3756_v51 = vld [vmem:[#allocation8 + $0x254] ss:$24 sps:$4 sm:$0xff]   ;;  %v3754_v57 = vld [vmem:[#allocation8 + $0x250] ss:$24 sps:$4 sm:$0xff]  }
 0x164   :  { %v4521_v60 = vpack.c.bf16 %v546_v59, %v542_v54  ;;  %1328 = vmatpush1.bf16.msra.mxu1 %v3700_v52  ;;  %2050 = vmatpush1.bf16.msra.mxu0 %v3703_v53  ;;  %v3759_v52 = vld [vmem:[#allocation10 + $0x24c] ss:$24 sps:$4 sm:$0xff]   ;;  %v3757_v59 = vld [vmem:[#allocation10 + $0x248] ss:$24 sps:$4 sm:$0xff]  }
 0x165   :  { %1329 = vmatprep.subr.bf16.mxu1 %v3708_v55  ;;  %2051 = vmatprep.subr.bf16.mxu0 %v3711_v56 }
 0x166   :  { %1147 = vmatprep.mubr.bf16.mxu1 %v4521_v60  ;;  %1260 = vmatprep.mubr.bf16.mxu0 %v4521_v60 }
 0x167   :  { %1148 = vmatmul.mubr.bf16.gmra.mrb[8].mxu1 %v4519_v58  ;;  %1261 = vmatmul.mubr.bf16.gmra.mrb[40].mxu0 %v4519_v58 }
 0x168   :  { %1330 = vmatpush1.bf16.msra.mxu1 %v3706_v61  ;;  %v550_v2 = vpop.f32.mrb[12].mxu0  ;;  %2052 = vmatpush1.bf16.msra.mxu0 %v3709_v62  ;;  %v3762_v61 = vld [vmem:[#allocation8 + $0x284] ss:$24 sps:$4 sm:$0xff]  }
 0x169   :  { %v552_v5 = vpop.f32.mrb[13].mxu0  ;;  %1331 = vmatprep.subr.bf16.mxu1 %v3714_v63  ;;  %2053 = vmatprep.subr.bf16.mxu0 %v3717_v1  ;;  %v3765_v62 = vld [vmem:[#allocation10 + $0x27c] ss:$24 sps:$4 sm:$0xff]   ;;  %v3760_v1 = vld [vmem:[#allocation8 + $0x280] ss:$24 sps:$4 sm:$0xff]  }
 0x16a   :  { %v554_v8 = vpop.f32.mrb[14].mxu0 }
 0x16b   :  { %v4527_v9 = vpack.c.bf16 %v554_v8, %v550_v2  ;;  %v556_v10 = vpop.f32.mrb[15].mxu0  ;;  %v3763_v2 = vld [vmem:[#allocation10 + $0x278] ss:$24 sps:$4 sm:$0xff]  }
 0x16c   :  { %v4529_v11 = vpack.c.bf16 %v556_v10, %v552_v5  ;;  %1332 = vmatpush1.bf16.msra.mxu1 %v3712_v3  ;;  %2054 = vmatpush1.bf16.msra.mxu0 %v3715_v4  ;;  %v3768_v4 = vld [vmem:[#allocation8 + $0x2b4] ss:$24 sps:$4 sm:$0xff]  }
 0x16d   :  { %1333 = vmatprep.subr.bf16.mxu1 %v3720_v6  ;;  %2055 = vmatprep.subr.bf16.mxu0 %v3723_v7  ;;  %v3771_v5 = vld [vmem:[#allocation10 + $0x2ac] ss:$24 sps:$4 sm:$0xff]  }
 0x16e   :  { %1157 = vmatprep.mubr.bf16.mxu1 %v4529_v11  ;;  %1270 = vmatprep.mubr.bf16.mxu0 %v4529_v11  ;;  %v132_v10 = vld [vmem:[#allocation7 + $0x8] sm:$0xff] }
 0x16f   :  { %1158 = vmatmul.mubr.bf16.gmra.mrb[12].mxu1 %v4527_v9  ;;  %1271 = vmatmul.mubr.bf16.gmra.mrb[44].mxu0 %v4527_v9 }
 0x170   :  { %1334 = vmatpush1.bf16.msra.mxu1 %v3718_v12  ;;  %v560_v16 = vpop.f32.mrb[16].mxu0  ;;  %2056 = vmatpush1.bf16.msra.mxu0 %v3721_v13  ;;  %v134_v12 = vld [vmem:[#allocation7 + $0x18] sm:$0xff] }
 0x171   :  { %v562_v19 = vpop.f32.mrb[17].mxu0  ;;  %1335 = vmatprep.subr.bf16.mxu1 %v3726_v14  ;;  %2057 = vmatprep.subr.bf16.mxu0 %v3729_v15  ;;  %v3766_v14 = vld [vmem:[#allocation8 + $0x2b0] ss:$24 sps:$4 sm:$0xff]  }
 0x172   :  { %v564_v22 = vpop.f32.mrb[18].mxu0  ;;  %v3769_v15 = vld [vmem:[#allocation10 + $0x2a8] ss:$24 sps:$4 sm:$0xff]  }
 0x173   :  { %v4535_v23 = vpack.c.bf16 %v564_v22, %v560_v16  ;;  %v566_v24 = vpop.f32.mrb[19].mxu0  ;;  %v3774_v16 = vld [vmem:[#allocation8 + $0x2e4] ss:$24 sps:$4 sm:$0xff]  }
 0x174   :  { %v4537_v25 = vpack.c.bf16 %v566_v24, %v562_v19  ;;  %1336 = vmatpush1.bf16.msra.mxu1 %v3724_v17  ;;  %2058 = vmatpush1.bf16.msra.mxu0 %v3727_v18  ;;  %v3777_v17 = vld [vmem:[#allocation10 + $0x2dc] ss:$24 sps:$4 sm:$0xff]   ;;  %v4565_v18 = vpack.c.bf16 %v134_v12, %v132_v10  ;;  %v3772_v19 = vld [vmem:[#allocation8 + $0x2e0] ss:$24 sps:$4 sm:$0xff]  }
 0x175   :  { %1337 = vmatprep.subr.bf16.mxu1 %v3732_v20  ;;  %2059 = vmatprep.subr.bf16.mxu0 %v3735_v21  ;;  %v3775_v20 = vld [vmem:[#allocation10 + $0x2d8] ss:$24 sps:$4 sm:$0xff]   ;;  %v3780_v21 = vld [vmem:[#allocation10 + $0x4] ss:$24 sps:$4 sm:$0xff]  }
 0x176   :  { %1167 = vmatprep.mubr.bf16.mxu1 %v4537_v25  ;;  %1280 = vmatprep.mubr.bf16.mxu0 %v4537_v25  ;;  %v131_v22 = vld [vmem:[#allocation7] sm:$0xff]  ;;  %v133_v24 = vld [vmem:[#allocation7 + $0x10] sm:$0xff]  ;;  %v150_v12 = vld [vmem:[#allocation7 + $0x98] sm:$0xff] }
 0x177   :  { %1168 = vmatmul.mubr.bf16.gmra.mrb[16].mxu1 %v4535_v23  ;;  %1281 = vmatmul.mubr.bf16.gmra.mrb[48].mxu0 %v4535_v23  ;;  %v4627_v10 = vld [vmem:[#allocation10 + $0x100] ss:$24 sps:$4 sm:$0xff]  }
 0x178   :  { %1338 = vmatpush1.bf16.msra.mxu1 %v3730_v26  ;;  %v570_v29 = vpop.f32.mrb[20].mxu0  ;;  %2060 = vmatpush1.bf16.msra.mxu0 %v3733_v27  ;;  %v4571_v26 = vld [vmem:[#allocation10 + $0x14] ss:$24 sps:$4 sm:$0xff]  }
 0x179   :  { %v572_v34 = vpop.f32.mrb[21].mxu0  ;;  %1339 = vmatprep.subr.bf16.mxu1 %v3738_v0  ;;  %2061 = vmatprep.subr.bf16.mxu0 %v3741_v28  ;;  %v136_v27 = vld [vmem:[#allocation7 + $0x28] sm:$0xff]  ;;  %v138_v0 = vld [vmem:[#allocation7 + $0x38] sm:$0xff] }
 0x17a   :  { %v574_v37 = vpop.f32.mrb[22].mxu0  ;;  %v3778_v28 = vld [vmem:[#allocation10] ss:$24 sps:$4 sm:$0xff]  }
 0x17b   :  { %v4543_v38 = vpack.c.bf16 %v574_v37, %v570_v29  ;;  %v576_v39 = vpop.f32.mrb[23].mxu0  ;;  %v4573_v29 = vpack.c.bf16 %v133_v24, %v131_v22  ;;  %v135_v37 = vld [vmem:[#allocation7 + $0x20] sm:$0xff] }
 0x17c   :  { %v4545_v40 = vpack.c.bf16 %v576_v39, %v572_v34  ;;  %1340 = vmatpush1.bf16.msra.mxu1 %v3736_v31  ;;  %2062 = vmatpush1.bf16.msra.mxu0 %v3739_v33  ;;  %v4575_v31 = vpack.c.bf16 %v138_v0, %v136_v27  ;;  %v4577_v33 = vld [vmem:[#allocation10 + $0x10] ss:$24 sps:$4 sm:$0xff]   ;;  %v4581_v34 = vld [vmem:[#allocation10 + $0x44] ss:$24 sps:$4 sm:$0xff]   ;;  %v4647_v0 = vld [vmem:[#allocation10 + $0x160] ss:$24 sps:$4 sm:$0xff]  }
 0x17d   :  { %1341 = vmatprep.subr.bf16.mxu1 %v3744_v35  ;;  %2063 = vmatprep.subr.bf16.mxu0 %v3747_v36  ;;  %v3781_v35 = vld [vmem:[#allocation10 + $0x30] ss:$24 sps:$4 sm:$0xff]   ;;  %v3786_v36 = vld [vmem:[#allocation10 + $0x64] ss:$24 sps:$4 sm:$0xff]  }
 0x17e   :  { %1177 = vmatprep.mubr.bf16.mxu1 %v4545_v40  ;;  %1290 = vmatprep.mubr.bf16.mxu0 %v4545_v40  ;;  %v137_v39 = vld [vmem:[#allocation7 + $0x30] sm:$0xff]  ;;  %v3810_v22 = vld [vmem:[#allocation10 + $0x184] ss:$24 sps:$4 sm:$0xff]  }
 0x17f   :  { %1178 = vmatmul.mubr.bf16.gmra.mrb[20].mxu1 %v4543_v38  ;;  %1291 = vmatmul.mubr.bf16.gmra.mrb[52].mxu0 %v4543_v38  ;;  %v147_v24 = vld [vmem:[#allocation7 + $0x80] sm:$0xff]  ;;  %v149_v27 = vld [vmem:[#allocation7 + $0x90] sm:$0xff] }
 0x180   :  { %1342 = vmatpush1.bf16.msra.mxu1 %v3742_v41  ;;  %v580_v47 = vpop.f32.mrb[24].mxu0  ;;  %2064 = vmatpush1.bf16.msra.mxu0 %v3745_v42  ;;  %v4587_v41 = vld [vmem:[#allocation10 + $0x40] ss:$24 sps:$4 sm:$0xff]   ;;  %v140_v42 = vld [vmem:[#allocation7 + $0x48] sm:$0xff] }
 0x181   :  { %v582_v50 = vpop.f32.mrb[25].mxu0  ;;  %1343 = vmatprep.subr.bf16.mxu1 %v3750_v43  ;;  %2065 = vmatprep.subr.bf16.mxu0 %v3753_v45  ;;  %v4590_v43 = vld [vmem:[#allocation10 + $0x74] ss:$24 sps:$4 sm:$0xff]   ;;  %v3784_v45 = vld [vmem:[#allocation10 + $0x60] ss:$24 sps:$4 sm:$0xff]  }
 0x182   :  { %v584_v53 = vpop.f32.mrb[26].mxu0 }
 0x183   :  { %v4551_v54 = vpack.c.bf16 %v584_v53, %v580_v47  ;;  %v586_v55 = vpop.f32.mrb[27].mxu0  ;;  %v4592_v47 = vpack.c.bf16 %v137_v39, %v135_v37  ;;  %v139_v53 = vld [vmem:[#allocation7 + $0x40] sm:$0xff]  ;;  %v4657_v39 = vld [vmem:[#allocation10 + $0x190] ss:$24 sps:$4 sm:$0xff]  }
 0x184   :  { %v4553_v56 = vpack.c.bf16 %v586_v55, %v582_v50  ;;  %1344 = vmatpush1.bf16.msra.mxu1 %v3748_v48  ;;  %2066 = vmatpush1.bf16.msra.mxu0 %v3751_v49  ;;  %v4597_v49 = vld [vmem:[#allocation10 + $0x70] ss:$24 sps:$4 sm:$0xff]   ;;  %v4601_v50 = vld [vmem:[#allocation10 + $0xa4] ss:$24 sps:$4 sm:$0xff]  }
 0x185   :  { %1345 = vmatprep.subr.bf16.mxu1 %v3756_v51  ;;  %2067 = vmatprep.subr.bf16.mxu0 %v3759_v52  ;;  %v3787_v51 = vld [vmem:[#allocation10 + $0x90] ss:$24 sps:$4 sm:$0xff]   ;;  %v3792_v52 = vld [vmem:[#allocation10 + $0xc4] ss:$24 sps:$4 sm:$0xff]  }
 0x186   :  { %1187 = vmatprep.mubr.bf16.mxu1 %v4553_v56  ;;  %1300 = vmatprep.mubr.bf16.mxu0 %v4553_v56  ;;  %v141_v55 = vld [vmem:[#allocation7 + $0x50] sm:$0xff] }
 0x187   :  { %1188 = vmatmul.mubr.bf16.gmra.mrb[24].mxu1 %v4551_v54  ;;  %1301 = vmatmul.mubr.bf16.gmra.mrb[56].mxu0 %v4551_v54 }
 0x188   :  { %1346 = vmatpush1.bf16.msra.mxu1 %v3754_v57  ;;  %v590_v63 = vpop.f32.mrb[28].mxu0  ;;  %2068 = vmatpush1.bf16.msra.mxu0 %v3757_v59  ;;  %v4607_v57 = vld [vmem:[#allocation10 + $0xa0] ss:$24 sps:$4 sm:$0xff]  }
 0x189   :  { %v592_v3 = vpop.f32.mrb[29].mxu0  ;;  %1347 = vmatprep.subr.bf16.mxu1 %v3762_v61  ;;  %2069 = vmatprep.subr.bf16.mxu0 %v3765_v62  ;;  %v146_v59 = vld [vmem:[#allocation7 + $0x78] sm:$0xff]  ;;  %v4610_v61 = vld [vmem:[#allocation10 + $0xd4] ss:$24 sps:$4 sm:$0xff]  }
 0x18a   :  { %v594_v6 = vpop.f32.mrb[30].mxu0  ;;  %v3790_v62 = vld [vmem:[#allocation10 + $0xc0] ss:$24 sps:$4 sm:$0xff]  }
 0x18b   :  { %v4559_v7 = vpack.c.bf16 %v594_v6, %v590_v63  ;;  %v596_v8 = vpop.f32.mrb[31].mxu0  ;;  %v4612_v63 = vpack.c.bf16 %v141_v55, %v139_v53  ;;  %v143_v6 = vld [vmem:[#allocation7 + $0x60] sm:$0xff]  ;;  %v158_v53 = vld [vmem:[#allocation7 + $0xd8] sm:$0xff]  ;;  %v4670_v55 = vld [vmem:[#allocation10 + $0x1f4] ss:$24 sps:$4 sm:$0xff]  }
 0x18c   :  { %v4561_v13 = vpack.c.bf16 %v596_v8, %v592_v3  ;;  %1348 = vmatpush1.bf16.msra.mxu1 %v3760_v1  ;;  %2070 = vmatpush1.bf16.msra.mxu0 %v3763_v2  ;;  %v4617_v2 = vld [vmem:[#allocation10 + $0xd0] ss:$24 sps:$4 sm:$0xff]   ;;  %v4621_v3 = vld [vmem:[#allocation10 + $0x104] ss:$24 sps:$4 sm:$0xff]  }
 0x18d   :  { %1349 = vmatprep.subr.bf16.mxu1 %v3768_v4  ;;  %2071 = vmatprep.subr.bf16.mxu0 %v3771_v5  ;;  %v3793_v4 = vld [vmem:[#allocation10 + $0xf0] ss:$24 sps:$4 sm:$0xff]   ;;  %v3798_v5 = vld [vmem:[#allocation10 + $0x124] ss:$24 sps:$4 sm:$0xff]  }
 0x18e   :  { %1197 = vmatprep.mubr.bf16.mxu1 %v4561_v13  ;;  %1310 = vmatprep.mubr.bf16.mxu0 %v4561_v13  ;;  %v145_v8 = vld [vmem:[#allocation7 + $0x70] sm:$0xff] }
 0x18f   :  { %1198 = vmatmul.mubr.bf16.gmra.mrb[28].mxu1 %v4559_v7  ;;  %1311 = vmatmul.mubr.bf16.gmra.mrb[60].mxu0 %v4559_v7 }
 0x190   :  { %1350 = vmatpush1.bf16.msra.mxu1 %v3766_v14  ;;  %1353 = vmatprep.mubr.bf16.mxu1 %v4505_v32  ;;  %v3783_v32 = vld [vmem:[#allocation10 + $0x34] ss:$24 sps:$4 sm:$0xff]  }
 0x191   :  { %2072 = vmatpush1.bf16.msra.mxu0 %v3769_v15  ;;  %1351 = vmatprep.subr.bf16.mxu1 %v3774_v16  ;;  %v4630_v14 = vld [vmem:[#allocation10 + $0x134] ss:$24 sps:$4 sm:$0xff]   ;;  %v3796_v15 = vld [vmem:[#allocation10 + $0x120] ss:$24 sps:$4 sm:$0xff]   ;;  %v4632_v16 = vpack.c.bf16 %v145_v8, %v143_v6  ;;  %v3834_v6 = vld [vmem:[#allocation10 + $0x244] ss:$24 sps:$4 sm:$0xff]  }
 0x192   :  { %2073 = vmatprep.subr.bf16.mxu0 %v3777_v17  ;;  %2075 = vmatprep.mubr.bf16.mxu0 %v4565_v18  ;;  %v155_v8 = vld [vmem:[#allocation7 + $0xc0] sm:$0xff] }
 0x194   :  { %1352 = vmatpush1.bf16.msra.mxu1 %v3772_v19  ;;  %v4637_v19 = vld [vmem:[#allocation10 + $0x130] ss:$24 sps:$4 sm:$0xff]  }
 0x195   :  { %2074 = vmatpush1.bf16.msra.mxu0 %v3775_v20  ;;  %1930 = vmatprep.subr.bf16.mxu1 %v3780_v21  ;;  %v4641_v20 = vld [vmem:[#allocation10 + $0x164] ss:$24 sps:$4 sm:$0xff]   ;;  %v3802_v21 = vld [vmem:[#allocation10 + $0x150] ss:$24 sps:$4 sm:$0xff]  }
 0x196   :  { %2156 = vmatprep.subr.bf16.mxu0 %v4571_v26 }
 0x197   :  { %1354 = vmatmul.mubr.bf16.vlgmr.msra.gmra.mrb[32].mxu1 %v4503_v30  ;;  %v142_v30 = vld [vmem:[#allocation7 + $0x58] sm:$0xff] }
 0x198   :  { %1931 = vmatpush1.bf16.msra.mxu1 %v3778_v28  ;;  %2076 = vmatmul.mubr.bf16.vlgmr.msra.gmra.mrb[32].mxu0 %v4573_v29  ;;  %v4594_v48 = vpack.c.bf16 %v142_v30, %v140_v42  ;;  %v154_v28 = vld [vmem:[#allocation7 + $0xb8] sm:$0xff]  ;;  %v3814_v30 = vld [vmem:[#allocation10 + $0x1b0] ss:$24 sps:$4 sm:$0xff]  }
 0x199   :  { %1363 = vmatprep.mubr.bf16.mxu1 %v4513_v46  ;;  %1932 = vmatprep.subr.bf16.mxu1 %v3783_v32  ;;  %v3789_v46 = vld [vmem:[#allocation10 + $0x94] ss:$24 sps:$4 sm:$0xff]   ;;  %v4661_v42 = vld [vmem:[#allocation10 + $0x1c4] ss:$24 sps:$4 sm:$0xff]  }
 0x19a   :  { %2085 = vmatprep.mubr.bf16.mxu0 %v4575_v31  ;;  %2157 = vmatpush1.bf16.msra.mxu0 %v4577_v33  ;;  %v4650_v32 = vld [vmem:[#allocation10 + $0x194] ss:$24 sps:$4 sm:$0xff]  }
 0x19b   :  { %2158 = vmatprep.subr.bf16.mxu0 %v4581_v34 }
 0x19c   :  { %1933 = vmatpush1.bf16.msra.mxu1 %v3781_v35  ;;  %v3808_v35 = vld [vmem:[#allocation10 + $0x180] ss:$24 sps:$4 sm:$0xff]  }
 0x19d   :  { %1934 = vmatprep.subr.bf16.mxu1 %v3786_v36  ;;  %v4652_v36 = vpack.c.bf16 %v149_v27, %v147_v24  ;;  %v4697_v27 = vld [vmem:[#allocation10 + $0x250] ss:$24 sps:$4 sm:$0xff]  }
 0x19e   :  { %2159 = vmatpush1.bf16.msra.mxu0 %v4587_v41 }
 0x19f   :  { %1364 = vmatmul.mubr.bf16.gmra.mrb[36].mxu1 %v4511_v44  ;;  %2160 = vmatprep.subr.bf16.mxu0 %v4590_v43  ;;  %v144_v44 = vld [vmem:[#allocation7 + $0x68] sm:$0xff] }
 0x1a0   :  { %1935 = vmatpush1.bf16.msra.mxu1 %v3784_v45  ;;  %2086 = vmatmul.mubr.bf16.gmra.mrb[36].mxu0 %v4592_v47  ;;  %v4614_v1 = vpack.c.bf16 %v146_v59, %v144_v44  ;;  %v3822_v45 = vld [vmem:[#allocation10 + $0x1e4] ss:$24 sps:$4 sm:$0xff]   ;;  %v3820_v44 = vld [vmem:[#allocation10 + $0x1e0] ss:$24 sps:$4 sm:$0xff]  }
 0x1a1   :  { %1373 = vmatprep.mubr.bf16.mxu1 %v4521_v60  ;;  %1936 = vmatprep.subr.bf16.mxu1 %v3789_v46  ;;  %v3795_v60 = vld [vmem:[#allocation10 + $0xf4] ss:$24 sps:$4 sm:$0xff]   ;;  %v151_v46 = vld [vmem:[#allocation7 + $0xa0] sm:$0xff] }
 0x1a2   :  { %2095 = vmatprep.mubr.bf16.mxu0 %v4594_v48  ;;  %2161 = vmatpush1.bf16.msra.mxu0 %v4597_v49 }
 0x1a3   :  { %2162 = vmatprep.subr.bf16.mxu0 %v4601_v50 }
 0x1a4   :  { %1937 = vmatpush1.bf16.msra.mxu1 %v3787_v51  ;;  %v153_v51 = vld [vmem:[#allocation7 + $0xb0] sm:$0xff] }
 0x1a5   :  { %1938 = vmatprep.subr.bf16.mxu1 %v3792_v52  ;;  %v4667_v52 = vld [vmem:[#allocation10 + $0x1c0] ss:$24 sps:$4 sm:$0xff]   ;;  %v4672_v59 = vpack.c.bf16 %v153_v51, %v151_v46 }
 0x1a6   :  { %2163 = vmatpush1.bf16.msra.mxu0 %v4607_v57  ;;  %v3844_v46 = vld [vmem:[#allocation10 + $0x2a0] ss:$24 sps:$4 sm:$0xff]  }
 0x1a7   :  { %1374 = vmatmul.mubr.bf16.gmra.mrb[40].mxu1 %v4519_v58  ;;  %2164 = vmatprep.subr.bf16.mxu0 %v4610_v61  ;;  %v148_v58 = vld [vmem:[#allocation7 + $0x88] sm:$0xff] }
 0x1a8   :  { %1939 = vmatpush1.bf16.msra.mxu1 %v3790_v62  ;;  %2096 = vmatmul.mubr.bf16.gmra.mrb[40].mxu0 %v4612_v63  ;;  %v4634_v17 = vpack.c.bf16 %v150_v12, %v148_v58  ;;  %v157_v58 = vld [vmem:[#allocation7 + $0xd0] sm:$0xff]  ;;  %v4687_v12 = vld [vmem:[#allocation10 + $0x220] ss:$24 sps:$4 sm:$0xff]  }
 0x1a9   :  { %1383 = vmatprep.mubr.bf16.mxu1 %v4529_v11  ;;  %1940 = vmatprep.subr.bf16.mxu1 %v3795_v60  ;;  %v3804_v11 = vld [vmem:[#allocation10 + $0x154] ss:$24 sps:$4 sm:$0xff]   ;;  %v4677_v60 = vld [vmem:[#allocation10 + $0x1f0] ss:$24 sps:$4 sm:$0xff]  }
 0x1aa   :  { %2105 = vmatprep.mubr.bf16.mxu0 %v4614_v1  ;;  %2165 = vmatpush1.bf16.msra.mxu0 %v4617_v2 }
 0x1ab   :  { %2166 = vmatprep.subr.bf16.mxu0 %v4621_v3 }
 0x1ac   :  { %1941 = vmatpush1.bf16.msra.mxu1 %v3793_v4  ;;  %v4681_v4 = vld [vmem:[#allocation10 + $0x224] ss:$24 sps:$4 sm:$0xff]  }
 0x1ad   :  { %1942 = vmatprep.subr.bf16.mxu1 %v3798_v5  ;;  %v3826_v5 = vld [vmem:[#allocation10 + $0x210] ss:$24 sps:$4 sm:$0xff]  }
 0x1ae   :  { %2167 = vmatpush1.bf16.msra.mxu0 %v4627_v10 }
 0x1af   :  { %1384 = vmatmul.mubr.bf16.gmra.mrb[44].mxu1 %v4527_v9  ;;  %2168 = vmatprep.subr.bf16.mxu0 %v4630_v14  ;;  %v152_v9 = vld [vmem:[#allocation7 + $0xa8] sm:$0xff] }
 0x1b0   :  { %1943 = vmatpush1.bf16.msra.mxu1 %v3796_v15  ;;  %2106 = vmatmul.mubr.bf16.gmra.mrb[44].mxu0 %v4632_v16  ;;  %v4654_v37 = vpack.c.bf16 %v154_v28, %v152_v9  ;;  %v162_v15 = vld [vmem:[#allocation7 + $0xf8] sm:$0xff]  ;;  %v3838_v28 = vld [vmem:[#allocation10 + $0x270] ss:$24 sps:$4 sm:$0xff]  }
 0x1b1   :  { %1393 = vmatprep.mubr.bf16.mxu1 %v4537_v25  ;;  %1944 = vmatprep.subr.bf16.mxu1 %v3804_v11  ;;  %v3816_v25 = vld [vmem:[#allocation10 + $0x1b4] ss:$24 sps:$4 sm:$0xff]   ;;  %v4701_v9 = vld [vmem:[#allocation10 + $0x284] ss:$24 sps:$4 sm:$0xff]  }
 0x1b2   :  { %2115 = vmatprep.mubr.bf16.mxu0 %v4634_v17  ;;  %2169 = vmatpush1.bf16.msra.mxu0 %v4637_v19  ;;  %v4690_v11 = vld [vmem:[#allocation10 + $0x254] ss:$24 sps:$4 sm:$0xff]  }
 0x1b3   :  { %2170 = vmatprep.subr.bf16.mxu0 %v4641_v20 }
 0x1b4   :  { %1945 = vmatpush1.bf16.msra.mxu1 %v3802_v21  ;;  %v3832_v21 = vld [vmem:[#allocation10 + $0x240] ss:$24 sps:$4 sm:$0xff]  }
 0x1b5   :  { %1946 = vmatprep.subr.bf16.mxu1 %v3810_v22  ;;  %v4692_v22 = vpack.c.bf16 %v157_v58, %v155_v8 }
 0x1b6   :  { %2171 = vmatpush1.bf16.msra.mxu0 %v4647_v0 }
 0x1b7   :  { %1394 = vmatmul.mubr.bf16.gmra.mrb[48].mxu1 %v4535_v23  ;;  %2172 = vmatprep.subr.bf16.mxu0 %v4650_v32  ;;  %v156_v23 = vld [vmem:[#allocation7 + $0xc8] sm:$0xff] }
 0x1b8   :  { %1947 = vmatpush1.bf16.msra.mxu1 %v3808_v35  ;;  %2116 = vmatmul.mubr.bf16.gmra.mrb[48].mxu0 %v4652_v36  ;;  %v4674_v62 = vpack.c.bf16 %v158_v53, %v156_v23  ;;  %v3846_v35 = vld [vmem:[#allocation10 + $0x2a4] ss:$24 sps:$4 sm:$0xff]   ;;  %v4715_v23 = vld [vmem:[#allocation10 + $0x2b0] ss:$24 sps:$4 sm:$0xff]  }
 0x1b9   :  { %1403 = vmatprep.mubr.bf16.mxu1 %v4545_v40  ;;  %1948 = vmatprep.subr.bf16.mxu1 %v3816_v25  ;;  %v3828_v40 = vld [vmem:[#allocation10 + $0x214] ss:$24 sps:$4 sm:$0xff]   ;;  %v159_v25 = vld [vmem:[#allocation7 + $0xe0] sm:$0xff] }
 0x1ba   :  { %2125 = vmatprep.mubr.bf16.mxu0 %v4654_v37  ;;  %2173 = vmatpush1.bf16.msra.mxu0 %v4657_v39  ;;  %v4719_v53 = vld [vmem:[#allocation10 + $0x2e4] ss:$24 sps:$4 sm:$0xff]  }
 0x1bb   :  { %2174 = vmatprep.subr.bf16.mxu0 %v4661_v42 }
 0x1bc   :  { %1949 = vmatpush1.bf16.msra.mxu1 %v3814_v30  ;;  %v161_v30 = vld [vmem:[#allocation7 + $0xf0] sm:$0xff] }
 0x1bd   :  { %1950 = vmatprep.subr.bf16.mxu1 %v3822_v45  ;;  %v4707_v45 = vld [vmem:[#allocation10 + $0x280] ss:$24 sps:$4 sm:$0xff]   ;;  %v4712_v51 = vpack.c.bf16 %v161_v30, %v159_v25 }
 0x1be   :  { %2175 = vmatpush1.bf16.msra.mxu0 %v4667_v52 }
 0x1bf   :  { %1404 = vmatmul.mubr.bf16.gmra.mrb[52].mxu1 %v4543_v38  ;;  %2176 = vmatprep.subr.bf16.mxu0 %v4670_v55  ;;  %v160_v38 = vld [vmem:[#allocation7 + $0xe8] sm:$0xff] }
 0x1c0   :  { %1951 = vmatpush1.bf16.msra.mxu1 %v3820_v44  ;;  %2126 = vmatmul.mubr.bf16.gmra.mrb[52].mxu0 %v4672_v59  ;;  %v4694_v24 = vpack.c.bf16 %v162_v15, %v160_v38  ;;  %v3850_v44 = vld [vmem:[#allocation10 + $0x2d0] ss:$24 sps:$4 sm:$0xff]  }
 0x1c1   :  { %1413 = vmatprep.mubr.bf16.mxu1 %v4553_v56  ;;  %1952 = vmatprep.subr.bf16.mxu1 %v3828_v40  ;;  %v3840_v56 = vld [vmem:[#allocation10 + $0x274] ss:$24 sps:$4 sm:$0xff]   ;;  %v3871_v40 = vld [vmem:[#allocation10 + $0x2e0] ss:$24 sps:$4 sm:$0xff]  }
 0x1c2   :  { %2135 = vmatprep.mubr.bf16.mxu0 %v4674_v62  ;;  %2177 = vmatpush1.bf16.msra.mxu0 %v4677_v60 }
 0x1c3   :  { %2178 = vmatprep.subr.bf16.mxu0 %v4681_v4 }
 0x1c4   :  { %1953 = vmatpush1.bf16.msra.mxu1 %v3826_v5 }
 0x1c5   :  { %1954 = vmatprep.subr.bf16.mxu1 %v3834_v6 }
 0x1c6   :  { %2179 = vmatpush1.bf16.msra.mxu0 %v4687_v12 }
 0x1c7   :  { %1414 = vmatmul.mubr.bf16.gmra.mrb[56].mxu1 %v4551_v54  ;;  %2180 = vmatprep.subr.bf16.mxu0 %v4690_v11  ;;  %v4710_v54 = vld [vmem:[#allocation10 + $0x2b4] ss:$24 sps:$4 sm:$0xff]  }
 0x1c8   :  { %1955 = vmatpush1.bf16.msra.mxu1 %v3832_v21  ;;  %2136 = vmatmul.mubr.bf16.gmra.mrb[56].mxu0 %v4692_v22 }
 0x1c9   :  { %1423 = vmatprep.mubr.bf16.mxu1 %v4561_v13  ;;  %1956 = vmatprep.subr.bf16.mxu1 %v3840_v56  ;;  %v3852_v13 = vld [vmem:[#allocation10 + $0x2d4] ss:$24 sps:$4 sm:$0xff]  }
 0x1ca   :  { %2145 = vmatprep.mubr.bf16.mxu0 %v4694_v24  ;;  %2181 = vmatpush1.bf16.msra.mxu0 %v4697_v27 }
 0x1cb   :  { %2182 = vmatprep.subr.bf16.mxu0 %v4701_v9 }
 0x1cc   :  { %1957 = vmatpush1.bf16.msra.mxu1 %v3838_v28 }
 0x1cd   :  { %1958 = vmatprep.subr.bf16.mxu1 %v3846_v35 }
 0x1ce   :  { %2183 = vmatpush1.bf16.msra.mxu0 %v4707_v45 }
 0x1cf   :  { %1424 = vmatmul.mubr.bf16.gmra.mrb[60].mxu1 %v4559_v7  ;;  %2184 = vmatprep.subr.bf16.mxu0 %v4710_v54  ;;  %v2334_v7 = vlaneseq }
 0x1d0   :  { %1959 = vmatpush1.bf16.msra.mxu1 %v3844_v46  ;;  %2146 = vmatmul.mubr.bf16.gmra.mrb[60].mxu0 %v4712_v51 }
 0x1d1   :  { %1960 = vmatprep.subr.bf16.mxu1 %v3852_v13  ;;  %1962 = vmatprep.mubr.bf16.mxu1 %v4565_v18 }
 0x1d2   :  { %2185 = vmatpush1.bf16.msra.mxu0 %v4715_v23  ;;  %2188 = vmatprep.mubr.bf16.mxu0 %v4565_v18  ;;  %v4787_v18 = vshrl.u32 %v2334_v7, 7 }
 0x1d3   :  { %2186 = vmatprep.subr.bf16.mxu0 %v4719_v53 }
 0x1d4   :  { %1961 = vmatpush1.bf16.msra.mxu1 %v3850_v44 }
 0x1d5   :  { %3443 = vmatprep.subr.bf16.mxu1 %v4571_v26  ;;  %v2344_v26 = vsub.s32 2, %v4787_v18 }
 0x1d6   :  { %2187 = vmatpush1.bf16.msra.mxu0 %v3871_v40 }
 0x1d7   :  { %1963 = vmatmul.mubr.bf16.vlgmr.msra.gmra.mrb[0].mxu1 %v4573_v29 }
 0x1d8   :  { %1972 = vmatprep.mubr.bf16.mxu1 %v4575_v31  ;;  %3459 = vmatpush1.bf16.msra.mxu1 %v4577_v33 }
 0x1d9   :  { %3444 = vmatprep.subr.bf16.mxu1 %v4581_v34  ;;  %2189 = vmatmul.mubr.bf16.vlgmr.msra.gmra.mrb[64].mxu0 %v4573_v29  ;;  %v4793_v29 = vld [vmem:[%s5532_s5] sm:$0xf] }
 0x1da   :  { %2198 = vmatprep.mubr.bf16.mxu0 %v4575_v31  ;;  %v2348_v31 = vsub.s32 3, %v4787_v18  ;;  %v4797_v33 = vrot.slane %v4793_v29, %v2344_v26 }
 0x1dc   :  { %3460 = vmatpush1.bf16.msra.mxu1 %v4587_v41  ;;  %v4800_v34 = vrot.slane %v4793_v29, %v2348_v31 }
 0x1dd   :  { %3445 = vmatprep.subr.bf16.mxu1 %v4590_v43 }
 0x1df   :  { %1973 = vmatmul.mubr.bf16.gmra.mrb[4].mxu1 %v4592_v47 }
 0x1e0   :  { %1982 = vmatprep.mubr.bf16.mxu1 %v4594_v48  ;;  %3461 = vmatpush1.bf16.msra.mxu1 %v4597_v49 }
 0x1e1   :  { %3446 = vmatprep.subr.bf16.mxu1 %v4601_v50  ;;  %2199 = vmatmul.mubr.bf16.gmra.mrb[68].mxu0 %v4592_v47 }
 0x1e2   :  { %2208 = vmatprep.mubr.bf16.mxu0 %v4594_v48 }
 0x1e4   :  { %3462 = vmatpush1.bf16.msra.mxu1 %v4607_v57 }
 0x1e5   :  { %3447 = vmatprep.subr.bf16.mxu1 %v4610_v61 }
 0x1e7   :  { %1983 = vmatmul.mubr.bf16.gmra.mrb[8].mxu1 %v4612_v63 }
 0x1e8   :  { %1992 = vmatprep.mubr.bf16.mxu1 %v4614_v1  ;;  %3463 = vmatpush1.bf16.msra.mxu1 %v4617_v2 }
 0x1e9   :  { %3448 = vmatprep.subr.bf16.mxu1 %v4621_v3  ;;  %2209 = vmatmul.mubr.bf16.gmra.mrb[72].mxu0 %v4612_v63 }
 0x1ea   :  { %2218 = vmatprep.mubr.bf16.mxu0 %v4614_v1 }
 0x1ec   :  { %3464 = vmatpush1.bf16.msra.mxu1 %v4627_v10 }
 0x1ed   :  { %3449 = vmatprep.subr.bf16.mxu1 %v4630_v14 }
 0x1ef   :  { %1993 = vmatmul.mubr.bf16.gmra.mrb[12].mxu1 %v4632_v16 }
 0x1f0   :  { %2002 = vmatprep.mubr.bf16.mxu1 %v4634_v17  ;;  %3465 = vmatpush1.bf16.msra.mxu1 %v4637_v19 }
 0x1f1   :  { %3450 = vmatprep.subr.bf16.mxu1 %v4641_v20  ;;  %2219 = vmatmul.mubr.bf16.gmra.mrb[76].mxu0 %v4632_v16 }
 0x1f2   :  { %2228 = vmatprep.mubr.bf16.mxu0 %v4634_v17 }
 0x1f4   :  { %3466 = vmatpush1.bf16.msra.mxu1 %v4647_v0 }
 0x1f5   :  { %3451 = vmatprep.subr.bf16.mxu1 %v4650_v32 }
 0x1f7   :  { %2003 = vmatmul.mubr.bf16.gmra.mrb[16].mxu1 %v4652_v36 }
 0x1f8   :  { %2012 = vmatprep.mubr.bf16.mxu1 %v4654_v37  ;;  %3467 = vmatpush1.bf16.msra.mxu1 %v4657_v39 }
 0x1f9   :  { %3452 = vmatprep.subr.bf16.mxu1 %v4661_v42  ;;  %2229 = vmatmul.mubr.bf16.gmra.mrb[80].mxu0 %v4652_v36 }
 0x1fa   :  { %2238 = vmatprep.mubr.bf16.mxu0 %v4654_v37 }
 0x1fc   :  { %3468 = vmatpush1.bf16.msra.mxu1 %v4667_v52 }
 0x1fd   :  { %3453 = vmatprep.subr.bf16.mxu1 %v4670_v55 }
 0x1ff   :  { %2013 = vmatmul.mubr.bf16.gmra.mrb[20].mxu1 %v4672_v59 }
 0x200   :  { %2022 = vmatprep.mubr.bf16.mxu1 %v4674_v62  ;;  %3469 = vmatpush1.bf16.msra.mxu1 %v4677_v60 }
 0x201   :  { %3454 = vmatprep.subr.bf16.mxu1 %v4681_v4  ;;  %2239 = vmatmul.mubr.bf16.gmra.mrb[84].mxu0 %v4672_v59 }
 0x204   :  { %3470 = vmatpush1.bf16.msra.mxu1 %v4687_v12 }
 0x205   :  { %3455 = vmatprep.subr.bf16.mxu1 %v4690_v11 }
 0x207   :  { %2023 = vmatmul.mubr.bf16.gmra.mrb[24].mxu1 %v4692_v22 }
 0x208   :  { %2032 = vmatprep.mubr.bf16.mxu1 %v4694_v24  ;;  %3471 = vmatpush1.bf16.msra.mxu1 %v4697_v27 }
 0x209   :  { %3456 = vmatprep.subr.bf16.mxu1 %v4701_v9 }
 0x20c   :  { %3472 = vmatpush1.bf16.msra.mxu1 %v4707_v45 }
 0x20d   :  { %3457 = vmatprep.subr.bf16.mxu1 %v4710_v54 }
 0x20f   :  { %2033 = vmatmul.mubr.bf16.gmra.mrb[28].mxu1 %v4712_v51 }
 0x210   :  { %3473 = vmatpush1.bf16.msra.mxu1 %v4715_v23  ;;  %2248 = vmatprep.mubr.bf16.mxu1 %v4674_v62 }
 0x211   :  { %3458 = vmatprep.subr.bf16.mxu1 %v4719_v53 }
 0x214   :  { %3474 = vmatpush1.bf16.msra.mxu1 %v3871_v40 }
 0x217   :  { %2249 = vmatmul.mubr.bf16.vlgmr.msra.gmra.mrb[64].mxu1 %v4692_v22 }
 0x218   :  { %2258 = vmatprep.mubr.bf16.mxu1 %v4694_v24 }
 0x21f   :  { %2259 = vmatmul.mubr.bf16.gmra.mrb[68].mxu1 %v4712_v51 }
 0x26a   :  { %v4802_v41 = vpop.f32.mrb[32].mxu1 }
 0x26b   :  { %v2077_v43 = vpop.f32.mrb[32].mxu0  ;;  %v4804_v47 = vpop.f32.mrb[33].mxu1 }
 0x26c   :  { %v2356_v48 = vadd.f32 %v4797_v33, %v2077_v43  ;;  %v2079_v49 = vpop.f32.mrb[33].mxu0  ;;  %v4807_v50 = vpop.f32.mrb[34].mxu1 }
 0x26d   :  { %v2357_v57 = vadd.f32 %v4800_v34, %v2079_v49  ;;  %v2081_v61 = vpop.f32.mrb[34].mxu0  ;;  %v4810_v63 = vpop.f32.mrb[35].mxu1 }
 0x26e   :  { %v3381_v1 = vmul.f32 -1.442695, %v2356_v48  ;;  %v2360_v2 = vadd.f32 %v4797_v33, %v2081_v61  ;;  %v2083_v3 = vpop.f32.mrb[35].mxu0 }
 0x26f   :  { %v3382_v10 = vmul.f32 -1.442695, %v2357_v57  ;;  %v2361_v16 = vadd.f32 %v4800_v34, %v2083_v3 }
 0x270   :  { %v3385_v14 = vmul.f32 -1.442695, %v2360_v2  ;;  %3874 = vpow2.f32 %v3381_v1 }
 0x271   :  { %3876 = vpow2.f32 %v3382_v10  ;;  %v3386_v0 = vmul.f32 -1.442695, %v2361_v16 }
 0x272   :  { %v4814_v17 = vpop.f32.mrb[36].mxu1  ;;  %3878 = vpow2.f32 %v3385_v14 }
 0x273   :  { %v2087_v19 = vpop.f32.mrb[36].mxu0  ;;  %v4816_v20 = vpop.f32.mrb[37].mxu1  ;;  %3880 = vpow2.f32 %v3386_v0 }
 0x274   :  { %v2364_v32 = vadd.f32 %v4797_v33, %v2087_v19  ;;  %v2089_v36 = vpop.f32.mrb[37].mxu0  ;;  %v4819_v37 = vpop.f32.mrb[38].mxu1 }
 0x275   :  { %v2365_v39 = vadd.f32 %v4800_v34, %v2089_v36  ;;  %v2091_v42 = vpop.f32.mrb[38].mxu0  ;;  %v4822_v52 = vpop.f32.mrb[39].mxu1 }
 0x276   :  { %v3389_v55 = vmul.f32 -1.442695, %v2364_v32  ;;  %v2368_v59 = vadd.f32 %v4797_v33, %v2091_v42  ;;  %v2093_v62 = vpop.f32.mrb[39].mxu0 }
 0x277   :  { %v3390_v60 = vmul.f32 -1.442695, %v2365_v39  ;;  %v2369_v5 = vadd.f32 %v4800_v34, %v2093_v62 }
 0x278   :  { %v3393_v4 = vmul.f32 -1.442695, %v2368_v59  ;;  %3882 = vpow2.f32 %v3389_v55 }
 0x279   :  { %3884 = vpow2.f32 %v3390_v60  ;;  %v3394_v24 = vmul.f32 -1.442695, %v2369_v5 }
 0x27a   :  { %v4826_v6 = vpop.f32.mrb[40].mxu1  ;;  %v3875_v12 = vpop.eup %3874  ;;  %3886 = vpow2.f32 %v3393_v4 }
 0x27b   :  { %v2097_v8 = vpop.f32.mrb[40].mxu0  ;;  %v4828_v58 = vpop.f32.mrb[41].mxu1  ;;  %v2612_v28 = vadd.f32 1.0, %v3875_v12  ;;  %3888 = vpow2.f32 %v3394_v24 }
 0x27c   :  { %v2099_v38 = vpop.f32.mrb[41].mxu0  ;;  %v4830_v15 = vpop.f32.mrb[42].mxu1  ;;  %v2372_v27 = vadd.f32 %v4797_v33, %v2097_v8 }
 0x27d   :  { %v3877_v11 = vpop.eup %3876  ;;  %v2101_v21 = vpop.f32.mrb[42].mxu0  ;;  %v2373_v35 = vadd.f32 %v4800_v34, %v2099_v38  ;;  %3890 = vrcp.f32 %v2612_v28 }
 0x27e   :  { %v4832_v22 = vpop.f32.mrb[43].mxu1  ;;  %v3879_v56 = vpop.eup %3878  ;;  %v2613_v25 = vadd.f32 1.0, %v3877_v11  ;;  %v2376_v30 = vadd.f32 %v4797_v33, %v2101_v21  ;;  %v3397_v46 = vmul.f32 -1.442695, %v2372_v27 }
 0x27f   :  { %v2103_v9 = vpop.f32.mrb[43].mxu0  ;;  %v2616_v45 = vadd.f32 1.0, %v3879_v56  ;;  %v3881_v54 = vpop.eup %3880  ;;  %v3398_v23 = vmul.f32 -1.442695, %v2373_v35 }
 0x280   :  { %v2377_v51 = vadd.f32 %v4800_v34, %v2103_v9  ;;  %3892 = vrcp.f32 %v2613_v25  ;;  %v3401_v7 = vmul.f32 -1.442695, %v2376_v30  ;;  %v2617_v48 = vadd.f32 1.0, %v3881_v54 }
 0x281   :  { %3894 = vrcp.f32 %v2616_v45 }
 0x282   :  { %v4838_v13 = vpop.f32.mrb[44].mxu1  ;;  %v3883_v40 = vpop.eup %3882  ;;  %3896 = vpow2.f32 %v3397_v46  ;;  %v3402_v1 = vmul.f32 -1.442695, %v2377_v51 }
 0x283   :  { %v2107_v53 = vpop.f32.mrb[44].mxu0  ;;  %v4840_v44 = vpop.f32.mrb[45].mxu1  ;;  %v2620_v10 = vadd.f32 1.0, %v3883_v40  ;;  %3898 = vpow2.f32 %v3398_v23 }
 0x284   :  { %v2109_v26 = vpop.f32.mrb[45].mxu0  ;;  %v4842_v31 = vpop.f32.mrb[46].mxu1  ;;  %v2380_v2 = vadd.f32 %v4797_v33, %v2107_v53  ;;  %3900 = vpow2.f32 %v3401_v7 }
 0x285   :  { %v3885_v43 = vpop.eup %3884  ;;  %v2111_v49 = vpop.f32.mrb[46].mxu0  ;;  %v2381_v14 = vadd.f32 %v4800_v34, %v2109_v26  ;;  %3902 = vrcp.f32 %v2617_v48 }
 0x286   :  { %v4844_v57 = vpop.f32.mrb[47].mxu1  ;;  %v3887_v61 = vpop.eup %3886  ;;  %v2621_v16 = vadd.f32 1.0, %v3885_v43  ;;  %v2384_v19 = vadd.f32 %v4797_v33, %v2111_v49  ;;  %3904 = vpow2.f32 %v3402_v1  ;;  %v3405_v36 = vmul.f32 -1.442695, %v2380_v2 }
 0x287   :  { %v2113_v3 = vpop.f32.mrb[47].mxu0  ;;  %v2624_v0 = vadd.f32 1.0, %v3887_v61  ;;  %3906 = vrcp.f32 %v2620_v10  ;;  %v3406_v42 = vmul.f32 -1.442695, %v2381_v14  ;;  %v3889_v62 = vpop.eup %3888  ;;  %v4880_v14 = vsub.s32 0, %v4787_v18 }
 0x288   :  { %v2385_v32 = vadd.f32 %v4800_v34, %v2113_v3  ;;  %3908 = vrcp.f32 %v2621_v16  ;;  %v3409_v60 = vmul.f32 -1.442695, %v2384_v19  ;;  %v4857_v12 = vpop.eup %3890  ;;  %v2625_v23 = vadd.f32 1.0, %v3889_v62 }
 0x289   :  { %3910 = vrcp.f32 %v2624_v0 }
 0x28a   :  { %v4850_v39 = vpop.f32.mrb[48].mxu1  ;;  %v3410_v38 = vmul.f32 -1.442695, %v2385_v32  ;;  %v4862_v24 = vpop.eup %3892  ;;  %3912 = vpow2.f32 %v3405_v36 }
 0x28b   :  { %v2117_v55 = vpop.f32.mrb[48].mxu0  ;;  %v4852_v59 = vpop.f32.mrb[49].mxu1  ;;  %3914 = vpow2.f32 %v3406_v42  ;;  %v356_v42 = vld [vmem:[%s5533_s6] sm:$0x3] }
 0x28c   :  { %v2388_v4 = vadd.f32 %v4797_v33, %v2117_v55  ;;  %v2119_v5 = vpop.f32.mrb[49].mxu0  ;;  %v4855_v8 = vpop.f32.mrb[50].mxu1  ;;  %3916 = vpow2.f32 %v3409_v60 }
 0x28d   :  { %v2389_v11 = vadd.f32 %v4800_v34, %v2119_v5  ;;  %v2121_v21 = vpop.f32.mrb[50].mxu0  ;;  %v4860_v56 = vpop.f32.mrb[51].mxu1  ;;  %3918 = vpow2.f32 %v3410_v38 }
 0x28e   :  { %v3413_v27 = vmul.f32 -1.442695, %v2388_v4  ;;  %v2392_v9 = vadd.f32 %v4797_v33, %v2121_v21  ;;  %v2123_v28 = vpop.f32.mrb[51].mxu0  ;;  %v4865_v35 = vpop.eup %3894  ;;  %v4893_v4 = vsub.s32 1, %v4787_v18 }
 0x28f   :  { %v3414_v25 = vmul.f32 -1.442695, %v2389_v11  ;;  %v3897_v30 = vpop.eup %3896  ;;  %v2393_v46 = vadd.f32 %v4800_v34, %v2123_v28 }
 0x290   :  { %v3417_v45 = vmul.f32 -1.442695, %v2392_v9  ;;  %v3899_v54 = vpop.eup %3898  ;;  %3920 = vpow2.f32 %v3413_v27  ;;  %v2628_v7 = vadd.f32 1.0, %v3897_v30  ;;  %v4898_v9 = vrot.slane %v356_v42, %v4880_v14 }
 0x291   :  { %v3901_v51 = vpop.eup %3900  ;;  %3922 = vpow2.f32 %v3414_v25  ;;  %v3418_v26 = vmul.f32 -1.442695, %v2393_v46  ;;  %v2629_v61 = vadd.f32 1.0, %v3899_v54  ;;  %v4901_v46 = vrot.slane %v356_v42, %v4893_v4 }
 0x292   :  { %v4868_v53 = vpop.f32.mrb[52].mxu1  ;;  %v4870_v40 = vpop.eup %3902  ;;  %3924 = vpow2.f32 %v3417_v45  ;;  %v2632_v16 = vadd.f32 1.0, %v3901_v51 }
 0x293   :  { %v2127_v43 = vpop.f32.mrb[52].mxu0  ;;  %v4872_v48 = vpop.f32.mrb[53].mxu1  ;;  %3926 = vpow2.f32 %v3418_v26 }
 0x294   :  { %5559 = vst [vmem:[#allocation16_spill] sm:$0xff] %v4872_v48  ;;  %v3905_v49 = vpop.eup %3904  ;;  %v2396_v1 = vadd.f32 %v4797_v33, %v2127_v43  ;;  %v2129_v2 = vpop.f32.mrb[53].mxu0  ;;  %3928 = vrcp.f32 %v2625_v23 }
 0x295   :  { %v4875_v3 = vpop.f32.mrb[54].mxu1  ;;  %v4877_v10 = vpop.eup %3906  ;;  %v2397_v19 = vadd.f32 %v4800_v34, %v2129_v2  ;;  %3930 = vrcp.f32 %v2628_v7  ;;  %v2633_v30 = vadd.f32 1.0, %v3905_v49 }
 0x296   :  { %5560 = vst [vmem:[#allocation17_spill] sm:$0xff] %v4875_v3  ;;  %5561 = vst [vmem:[#allocation18_spill] sm:$0xff] %v4877_v10  ;;  %v2131_v0 = vpop.f32.mrb[54].mxu0  ;;  %v4883_v32 = vpop.f32.mrb[55].mxu1  ;;  %v3421_v55 = vmul.f32 -1.442695, %v2396_v1  ;;  %3932 = vrcp.f32 %v2629_v61 }
 0x297   :  { %5562 = vst [vmem:[#allocation19_spill] sm:$0xff] %v4883_v32  ;;  %v4885_v36 = vpop.eup %3908  ;;  %v2133_v62 = vpop.f32.mrb[55].mxu0  ;;  %v3422_v5 = vmul.f32 -1.442695, %v2397_v19  ;;  %v2400_v38 = vadd.f32 %v4797_v33, %v2131_v0  ;;  %3934 = vrcp.f32 %v2632_v16 }
 0x298   :  { %5563 = vst [vmem:[#allocation20_spill] sm:$0xff] %v4885_v36  ;;  %v4890_v60 = vpop.eup %3910  ;;  %v2401_v21 = vadd.f32 %v4800_v34, %v2133_v62  ;;  %3936 = vpow2.f32 %v3421_v55 }
 0x299   :  { %5564 = vst [vmem:[#allocation21_spill] sm:$0xff] %v4890_v60  ;;  %v3913_v11 = vpop.eup %3912  ;;  %v3425_v28 = vmul.f32 -1.442695, %v2400_v38  ;;  %3938 = vpow2.f32 %v3422_v5 }
 0x29a   :  { %v3915_v27 = vpop.eup %3914  ;;  %v3426_v45 = vmul.f32 -1.442695, %v2401_v21  ;;  %v1415_v18 = vpop.f32.mrb[56].mxu1  ;;  %v2636_v51 = vadd.f32 1.0, %v3913_v11 }
 0x29b   :  { %v3917_v25 = vpop.eup %3916  ;;  %v4904_v23 = vadd.f32 %v4898_v9, %v1415_v18  ;;  %v2137_v7 = vpop.f32.mrb[56].mxu0  ;;  %v2637_v61 = vadd.f32 1.0, %v3915_v27  ;;  %3940 = vpow2.f32 %v3425_v28 }
 0x29c   :  { %v3919_v54 = vpop.eup %3918  ;;  %v1417_v26 = vpop.f32.mrb[57].mxu1  ;;  %v2404_v1 = vadd.f32 %v4797_v33, %v2137_v7  ;;  %v2640_v19 = vadd.f32 1.0, %v3917_v25  ;;  %3942 = vpow2.f32 %v3426_v45 }
 0x29d   :  { %5565 = vst [vmem:[#allocation22_spill] sm:$0xff] %v4904_v23  ;;  %v3921_v43 = vpop.eup %3920  ;;  %v2139_v49 = vpop.f32.mrb[57].mxu0  ;;  %v4908_v0 = vadd.f32 %v4901_v46, %v1417_v26  ;;  %3944 = vrcp.f32 %v2633_v30  ;;  %v2641_v38 = vadd.f32 1.0, %v3919_v54 }
 0x29e   :  { %v1419_v2 = vpop.f32.mrb[58].mxu1  ;;  %v3923_v16 = vpop.eup %3922  ;;  %v2405_v42 = vadd.f32 %v4800_v34, %v2139_v49  ;;  %3946 = vrcp.f32 %v2636_v51  ;;  %v2644_v25 = vadd.f32 1.0, %v3921_v43  ;;  %v3429_v43 = vmul.f32 -1.442695, %v2404_v1 }
 0x29f   :  { %5566 = vst [vmem:[#allocation23_spill] sm:$0xff] %v4908_v0  ;;  %v2141_v55 = vpop.f32.mrb[58].mxu0  ;;  %v1421_v62 = vpop.f32.mrb[59].mxu1  ;;  %v4912_v11 = vadd.f32 %v4898_v9, %v1419_v2  ;;  %3948 = vrcp.f32 %v2637_v61  ;;  %v2645_v7 = vadd.f32 1.0, %v3923_v16 }
 0x2a0   :  { %v3925_v5 = vpop.eup %3924  ;;  %v2408_v21 = vadd.f32 %v4797_v33, %v2141_v55  ;;  %v2143_v27 = vpop.f32.mrb[59].mxu0  ;;  %v4916_v45 = vadd.f32 %v4901_v46, %v1421_v62  ;;  %3950 = vrcp.f32 %v2640_v19 }
 0x2a1   :  { %5567 = vst [vmem:[#allocation24_spill] sm:$0xff] %v4912_v11  ;;  %v3927_v28 = vpop.eup %3926  ;;  %v2409_v26 = vadd.f32 %v4800_v34, %v2143_v27  ;;  %v2648_v54 = vadd.f32 1.0, %v3925_v5  ;;  %3952 = vrcp.f32 %v2641_v38  ;;  %v3430_v27 = vmul.f32 -1.442695, %v2405_v42 }
 0x2a2   :  { %5568 = vst [vmem:[#allocation25_spill] sm:$0xff] %v4916_v45  ;;  %v4918_v18 = vpop.eup %3928  ;;  %v2649_v2 = vadd.f32 1.0, %v3927_v28  ;;  %v1425_v55 = vpop.f32.mrb[60].mxu1  ;;  %3954 = vrcp.f32 %v2644_v25  ;;  %v3433_v38 = vmul.f32 -1.442695, %v2408_v21 }
 0x2a3   :  { %v4921_v30 = vpop.eup %3930  ;;  %v4928_v62 = vadd.f32 %v4898_v9, %v1425_v55  ;;  %v2147_v61 = vpop.f32.mrb[60].mxu0  ;;  %3956 = vrcp.f32 %v2645_v7  ;;  %v3434_v23 = vmul.f32 -1.442695, %v2409_v26 }
 0x2a4   :  { %5569 = vst [vmem:[#allocation26_spill] sm:$0xff] %v4921_v30  ;;  %v4923_v49 = vpop.eup %3932  ;;  %v1427_v16 = vpop.f32.mrb[61].mxu1  ;;  %v2412_v19 = vadd.f32 %v4797_v33, %v2147_v61  ;;  %3958 = vrcp.f32 %v2648_v54  ;;  %v4940_v61 = vrot.slane %v4793_v29, %v4880_v14 }
 0x2a5   :  { %5570 = vst [vmem:[#allocation27_spill] sm:$0xff] %v4923_v49  ;;  %v4925_v51 = vpop.eup %3934  ;;  %5572 = vst [vmem:[#allocation29_spill] sm:$0xff] %v4928_v62  ;;  %v2149_v5 = vpop.f32.mrb[61].mxu0  ;;  %v4932_v28 = vadd.f32 %v4901_v46, %v1427_v16  ;;  %3960 = vrcp.f32 %v2649_v2 }
 0x2a6   :  { %5571 = vst [vmem:[#allocation28_spill] sm:$0xff] %v4925_v51  ;;  %v3937_v45 = vpop.eup %3936  ;;  %v1429_v11 = vpop.f32.mrb[62].mxu1  ;;  %v2413_v1 = vadd.f32 %v4800_v34, %v2149_v5  ;;  %3962 = vpow2.f32 %v3429_v43  ;;  %v4945_v5 = vrot.slane %v4793_v29, %v4893_v4 }
 0x2a7   :  { %v3939_v0 = vpop.eup %3938  ;;  %5573 = vst [vmem:[#allocation30_spill] sm:$0xff] %v4932_v28  ;;  %v2151_v25 = vpop.f32.mrb[62].mxu0  ;;  %v4936_v7 = vadd.f32 %v4898_v9, %v1429_v11  ;;  %v2652_v21 = vadd.f32 1.0, %v3937_v45  ;;  %3964 = vpow2.f32 %v3430_v27 }
 0x2a8   :  { %v1431_v55 = vpop.f32.mrb[63].mxu1  ;;  %v3941_v62 = vpop.eup %3940  ;;  %v2416_v16 = vadd.f32 %v4797_v33, %v2151_v25  ;;  %v2653_v26 = vadd.f32 1.0, %v3939_v0  ;;  %3966 = vpow2.f32 %v3433_v38 }
 0x2a9   :  { %5574 = vst [vmem:[#allocation31_spill] sm:$0xff] %v4936_v7  ;;  %v2153_v42 = vpop.f32.mrb[63].mxu0  ;;  %v3943_v54 = vpop.eup %3942  ;;  %v4950_v11 = vadd.f32 %v4901_v46, %v1431_v55  ;;  %v2656_v51 = vadd.f32 1.0, %v3941_v62  ;;  %3968 = vpow2.f32 %v3434_v23  ;;  %v3437_v55 = vmul.f32 -1.442695, %v2412_v19 }
 0x2aa   :  { %v4947_v28 = vpop.eup %3944  ;;  %v2417_v2 = vadd.f32 %v4800_v34, %v2153_v42  ;;  %v2657_v33 = vadd.f32 1.0, %v3943_v54  ;;  %v1964_v43 = vpop.f32.mrb[0].mxu1  ;;  %3970 = vrcp.f32 %v2652_v21  ;;  %v357_v62 = vld [vmem:[%s5534_s7] sm:$0x3]  ;;  %v3438_v54 = vmul.f32 -1.442695, %v2413_v1 }
 0x2ab   :  { %5575 = vst [vmem:[#allocation32_spill] sm:$0xff] %v4947_v28  ;;  %5576 = vst [vmem:[#allocation33_spill] sm:$0xff] %v4950_v11  ;;  %v4953_v7 = vpop.eup %3946  ;;  %v2354_v0 = vadd.f32 %v4940_v61, %v1964_v43  ;;  %v1966_v27 = vpop.f32.mrb[1].mxu1  ;;  %3972 = vrcp.f32 %v2653_v26  ;;  %v3441_v19 = vmul.f32 -1.442695, %v2416_v16  ;;  %s4380_s7 = smov [#allocation11]  }
 0x2ac   :  { %5577 = vst [vmem:[#allocation34_spill] sm:$0xff] %v4953_v7  ;;  %v4955_v45 = vpop.eup %3948  ;;  %v2355_v34 = vadd.f32 %v4945_v5, %v1966_v27  ;;  %v1968_v42 = vpop.f32.mrb[2].mxu1  ;;  %3974 = vrcp.f32 %v2656_v51  ;;  %s3149_s26 = sshll.u32 %s4380_s7, 4  ;;  %s3150_s26 = int_to_ptr.vmem [resolvable:$true] %s3149_s26 }
 0x2ad   :  { %5578 = vst [vmem:[#allocation35_spill] sm:$0xff] %v4955_v45  ;;  %v4957_v29 = vpop.eup %3950  ;;  %v4966_v38 = vpop.f32.mrb[64].mxu0  ;;  %v3379_v21 = vmul.f32 -1.442695, %v2354_v0  ;;  %3976 = vrcp.f32 %v2657_v33  ;;  %v2358_v26 = vadd.f32 %v4940_v61, %v1968_v42  ;;  %v3442_v45 = vmul.f32 -1.442695, %v2417_v2  ;;  %p4341_p13 = scmp.lt.s32.totalorder %s3150_s26, %s3150_s26 }
 0x2ae   :  { %5579 = vst [vmem:[#allocation36_spill] sm:$0xff] %v4957_v29  ;;  %v4960_v25 = vpop.eup %3952  ;;  %v1970_v43 = vpop.f32.mrb[3].mxu1  ;;  %v3380_v0 = vmul.f32 -1.442695, %v2355_v34  ;;  %v4989_v33 = vadd.f32 %v4898_v9, %v4802_v41  ;;  %v4992_v2 = vrot.slane %v357_v62, %v4893_v4  ;;  %v5004_v41 = vadd.f32 %v4901_v46, %v4810_v63  ;;  %s4336_s27 = scalar_lea.vmem %s3150_s26, 4096 }
 0x2af   :  { %5580 = vst [vmem:[#allocation37_spill] sm:$0xff] %v4960_v25  ;;  %v4968_v23 = vpop.eup %3954  ;;  %v4970_v11 = vpop.f32.mrb[65].mxu0  ;;  %3978 = vpow2.f32 %v3379_v21  ;;  %v3383_v42 = vmul.f32 -1.442695, %v2358_v26  ;;  %v5008_v4 = vadd.f32 %v4898_v9, %v4814_v17  ;;  %p4337_p12 = scmp.ne.s32.totalorder %s3150_s26, %s4336_s27  ;;  %p4342_p0 = scmp.lt.s32.totalorder %s4336_s27, %s4336_s27 }
 0x2b0   :  { %5581 = vst [vmem:[#allocation38_spill] sm:$0xff] %v4968_v23  ;;  %v4972_v25 = vpop.eup %3956  ;;  %v4975_v27 = vpop.f32.mrb[66].mxu0  ;;  %v2359_v23 = vadd.f32 %v4945_v5, %v1970_v43  ;;  %3980 = vpow2.f32 %v3437_v55  ;;  %v4996_v43 = vadd.f32 %v4901_v46, %v4804_v47  ;;  %v5000_v55 = vadd.f32 %v4898_v9, %v4807_v50 }
 0x2b1   :  { %5582 = vst [vmem:[#allocation39_spill] sm:$0xff] %v4972_v25  ;;  %v4977_v29 = vpop.eup %3958  ;;  %v4980_v51 = vpop.f32.mrb[67].mxu0  ;;  %v4985_v25 = vrot.slane %v357_v62, %v4880_v14  ;;  %3982 = vpow2.f32 %v3438_v54  ;;  %v5013_v50 = vadd.f32 %v4901_v46, %v4816_v20  ;;  %p4343_p1 = por %p4342_p0, %p4341_p13 }
 0x2b2   :  { %5583 = vst [vmem:[#allocation40_spill] sm:$0xff] %v4977_v29  ;;  %v4982_v1 = vpop.eup %3960  ;;  %3984 = vpow2.f32 %v3441_v19  ;;  %v3384_v14 = vmul.f32 -1.442695, %v2359_v23  ;;  %v1974_v34 = vpop.f32.mrb[4].mxu1  ;;  %v5017_v23 = vadd.f32 %v4898_v9, %v4819_v37  ;;  %v5030_v37 = vadd.f32 %v4901_v46, %v4822_v52 }
 0x2b3   :  { %5584 = vst [vmem:[#allocation41_spill] sm:$0xff] %v4982_v1  ;;  %v3963_v16 = vpop.eup %3962  ;;  %3986 = vpow2.f32 %v3442_v45  ;;  %v2362_v47 = vadd.f32 %v4940_v61, %v1974_v34  ;;  %v1976_v62 = vpop.f32.mrb[5].mxu1  ;;  %p4344_p2 = pnand %p4343_p1, %p4337_p12 }
 0x2b4   :  { %v3965_v21 = vpop.eup %3964  ;;  %v2660_v19 = vadd.f32 1.0, %v3963_v16  ;;  %3988 = vpow2.f32 %v3380_v0  ;;  %v1978_v63 = vpop.f32.mrb[6].mxu1  ;;  %v2363_v29 = vadd.f32 %v4945_v5, %v1976_v62 }
 0x2b5   :  { %v3967_v1 = vpop.eup %3966  ;;  %v5019_v26 = vpop.f32.mrb[68].mxu0  ;;  %v2661_v45 = vadd.f32 1.0, %v3965_v21  ;;  %3990 = vpow2.f32 %v3383_v42  ;;  %v3387_v34 = vmul.f32 -1.442695, %v2362_v47  ;;  %v2366_v16 = vadd.f32 %v4940_v61, %v1978_v63 }
 0x2b6   :  { %v3969_v54 = vpop.eup %3968  ;;  %v1980_v7 = vpop.f32.mrb[7].mxu1  ;;  %v2664_v0 = vadd.f32 1.0, %v3967_v1  ;;  %3992 = vpow2.f32 %v3384_v14  ;;  %v5039_v42 = vadd.f32 %v4898_v9, %v4826_v6  ;;  %v5048_v1 = vadd.f32 %v4901_v46, %v4828_v58 }
 0x2b7   :  { %v5021_v17 = vpop.eup %3970  ;;  %v5024_v28 = vpop.f32.mrb[69].mxu0  ;;  %v2665_v47 = vadd.f32 1.0, %v3969_v54  ;;  %3994 = vpow2.f32 %v3387_v34  ;;  %v2367_v62 = vadd.f32 %v4945_v5, %v1980_v7  ;;  %v5052_v14 = vadd.f32 %v4898_v9, %v4830_v15 }
 0x2b8   :  { %5585 = vst [vmem:[#allocation42_spill] sm:$0xff] %v5021_v17  ;;  %v5026_v20 = vpop.eup %3972  ;;  %v5033_v49 = vpop.f32.mrb[70].mxu0  ;;  %v5056_v6 = vadd.f32 %v4901_v46, %v4832_v22  ;;  %3996 = vrcp.f32 %v2660_v19  ;;  %v5060_v7 = vadd.f32 %v4898_v9, %v4838_v13  ;;  %v5064_v63 = vadd.f32 %v4901_v46, %v4840_v44  ;;  %v4194_v17 = vld [vmem:[#allocation7] sm:$0xff] }
 0x2b9   :  { %5586 = vst [vmem:[#allocation43_spill] sm:$0xff] %v5026_v20  ;;  %v5035_v21 = vpop.eup %3974  ;;  %v5042_v20 = vpop.f32.mrb[71].mxu0  ;;  %3998 = vrcp.f32 %v2661_v45  ;;  %v3388_v58 = vmul.f32 -1.442695, %v2363_v29  ;;  %v5070_v15 = vadd.f32 %v4898_v9, %v4842_v31  ;;  %v3391_v19 = vmul.f32 -1.442695, %v2366_v16 }
 0x2ba   :  { %5587 = vst [vmem:[#allocation44_spill] sm:$0xff] %v5035_v21  ;;  %v5044_v52 = vpop.eup %3976  ;;  %4000 = vrcp.f32 %v2664_v0  ;;  %v5076_v13 = vadd.f32 %v4901_v46, %v4844_v57  ;;  %v3392_v44 = vmul.f32 -1.442695, %v2367_v62  ;;  %v5083_v0 = vmul.f32 %v4194_v17, %v4857_v12  ;;  %v4197_v16 = vld [vmem:[#allocation7 + $0x18] sm:$0xff] }
 0x2bb   :  { %5588 = vst [vmem:[#allocation45_spill] sm:$0xff] %v5044_v52  ;;  %v3979_v54 = vpop.eup %3978  ;;  %5590 = vst [vmem:[#allocation47_spill] sm:$0xff] %v5070_v15  ;;  %v1984_v52 = vpop.f32.mrb[8].mxu1  ;;  %4002 = vrcp.f32 %v2665_v47  ;;  %v4195_v47 = vld [vmem:[#allocation7 + $0x8] sm:$0xff]  ;;  %v5108_v48 = vmul.f32 %v4197_v16, %v4870_v40  ;;  %v5122_v16 = vadd.f32 %v4898_v9, %v4855_v8  ;;  %v5134_v8 = vadd.f32 %v4901_v46, %v4860_v56 }
 0x2bc   :  { %v5066_v34 = vpop.eup %3980  ;;  %v2610_v22 = vadd.f32 1.0, %v3979_v54  ;;  %5592 = vst [vmem:[#allocation49_spill] sm:$0xff] %v5076_v13  ;;  %v2370_v29 = vadd.f32 %v4940_v61, %v1984_v52  ;;  %v1986_v45 = vpop.f32.mrb[9].mxu1  ;;  %v5091_v62 = vmul.f32 %v4195_v47, %v4862_v24 }
 0x2bd   :  { %5589 = vst [vmem:[#allocation46_spill] sm:$0xff] %v5066_v34  ;;  %v5072_v21 = vpop.eup %3982  ;;  %v1988_v54 = vpop.f32.mrb[10].mxu1  ;;  %v2371_v31 = vadd.f32 %v4945_v5, %v1986_v45  ;;  %5595 = vst [vmem:[#allocation52_spill] sm:$0xff] %v5108_v48 }
 0x2be   :  { %5591 = vst [vmem:[#allocation48_spill] sm:$0xff] %v5072_v21  ;;  %v5079_v34 = vpop.eup %3984  ;;  %4004 = vrcp.f32 %v2610_v22  ;;  %v5086_v21 = vpop.f32.mrb[72].mxu0  ;;  %v3395_v52 = vmul.f32 -1.442695, %v2370_v29  ;;  %v4196_v22 = vld [vmem:[#allocation7 + $0x10] sm:$0xff]  ;;  %v2374_v29 = vadd.f32 %v4940_v61, %v1988_v54  ;;  %5599 = vst [vmem:[#allocation56_spill] sm:$0xff] %v5122_v16 }
 0x2bf   :  { %5593 = vst [vmem:[#allocation50_spill] sm:$0xff] %v5079_v34  ;;  %v5088_v57 = vpop.eup %3986  ;;  %4006 = vpow2.f32 %v3388_v58  ;;  %v1990_v34 = vpop.f32.mrb[11].mxu1  ;;  %v5098_v32 = vmul.f32 %v4196_v22, %v4865_v35  ;;  %v5112_v22 = vadd.f32 %v4898_v9, %v4850_v39  ;;  %v3396_v54 = vmul.f32 -1.442695, %v2371_v31  ;;  %5602 = vst [vmem:[#allocation59_spill] sm:$0xff] %v5134_v8  ;;  %v4200_v16 = vld [vmem:[#allocation7 + $0x30] sm:$0xff] }
 0x2c0   :  { %5594 = vst [vmem:[#allocation51_spill] sm:$0xff] %v5088_v57  ;;  %v5094_v13 = vpop.f32.mrb[73].mxu0  ;;  %v3989_v17 = vpop.eup %3988  ;;  %4008 = vpow2.f32 %v3391_v19  ;;  %v2375_v45 = vadd.f32 %v4945_v5, %v1990_v34  ;;  %v3399_v39 = vmul.f32 -1.442695, %v2374_v29 }
 0x2c1   :  { %v5101_v30 = vpop.f32.mrb[74].mxu0  ;;  %v3991_v47 = vpop.eup %3990  ;;  %v2611_v58 = vadd.f32 1.0, %v3989_v17  ;;  %4010 = vpow2.f32 %v3392_v44  ;;  %5596 = vst [vmem:[#allocation53_spill] sm:$0xff] %v5112_v22  ;;  %v5116_v44 = vadd.f32 %v4901_v46, %v4852_v59 }
 0x2c2   :  { %v5105_v15 = vpop.f32.mrb[75].mxu0  ;;  %v3993_v3 = vpop.eup %3992  ;;  %v2614_v19 = vadd.f32 1.0, %v3991_v47  ;;  %4012 = vpow2.f32 %v3395_v52  ;;  %v3400_v52 = vmul.f32 -1.442695, %v2375_v45 }
 0x2c3   :  { %v3995_v57 = vpop.eup %3994  ;;  %5597 = vst [vmem:[#allocation54_spill] sm:$0xff] %v5116_v44  ;;  %4014 = vrcp.f32 %v2611_v58  ;;  %v2615_v34 = vadd.f32 1.0, %v3993_v3  ;;  %v1994_v22 = vpop.f32.mrb[12].mxu1  ;;  %v2856_v3 = vadd.f32 %v4985_v25, %v4966_v38  ;;  %v5154_v38 = vmul.f32 %v4200_v16, %v4890_v60 }
 0x2c4   :  { %v5118_v17 = vpop.eup %3996  ;;  %4016 = vrcp.f32 %v2614_v19  ;;  %v2618_v48 = vadd.f32 1.0, %v3995_v57  ;;  %v2378_v59 = vadd.f32 %v4940_v61, %v1994_v22  ;;  %v1996_v44 = vpop.f32.mrb[13].mxu1  ;;  %v4198_v22 = vld [vmem:[#allocation7 + $0x20] sm:$0xff] }
 0x2c5   :  { %5598 = vst [vmem:[#allocation55_spill] sm:$0xff] %v5118_v17  ;;  %v5124_v47 = vpop.eup %3998  ;;  %4018 = vrcp.f32 %v2615_v34  ;;  %v2379_v57 = vadd.f32 %v4945_v5, %v1996_v44  ;;  %v1998_v29 = vpop.f32.mrb[14].mxu1  ;;  %v5142_v34 = vmul.f32 %v4198_v22, %v4877_v10  ;;  %5606 = vst [vmem:[#allocation63_spill] sm:$0xff] %v5154_v38 }
 0x2c6   :  { %5600 = vst [vmem:[#allocation57_spill] sm:$0xff] %v5124_v47  ;;  %v5129_v31 = vpop.eup %4000  ;;  %4020 = vrcp.f32 %v2618_v48  ;;  %v5137_v19 = vpop.f32.mrb[76].mxu0  ;;  %v3403_v58 = vmul.f32 -1.442695, %v2378_v59  ;;  %v4199_v48 = vld [vmem:[#allocation7 + $0x28] sm:$0xff] }
 0x2c7   :  { %5601 = vst [vmem:[#allocation58_spill] sm:$0xff] %v5129_v31  ;;  %v5139_v45 = vpop.eup %4002  ;;  %5604 = vst [vmem:[#allocation61_spill] sm:$0xff] %v5142_v34  ;;  %4022 = vpow2.f32 %v3396_v54  ;;  %v2000_v31 = vpop.f32.mrb[15].mxu1  ;;  %v5148_v44 = vmul.f32 %v4199_v48, %v4885_v36  ;;  %v2382_v54 = vadd.f32 %v4940_v61, %v1998_v29 }
 0x2c8   :  { %5603 = vst [vmem:[#allocation60_spill] sm:$0xff] %v5139_v45  ;;  %v5145_v47 = vpop.f32.mrb[77].mxu0  ;;  %v4005_v56 = vpop.eup %4004  ;;  %4024 = vpow2.f32 %v3399_v39  ;;  %v3404_v45 = vmul.f32 -1.442695, %v2379_v57  ;;  %v2383_v17 = vadd.f32 %v4945_v5, %v2000_v31  ;;  %v2857_v39 = vadd.f32 %v4992_v2, %v4970_v11 }
 0x2c9   :  { %5605 = vst [vmem:[#allocation62_spill] sm:$0xff] %v5148_v44  ;;  %v5151_v8 = vpop.f32.mrb[78].mxu0  ;;  %v4007_v22 = vpop.eup %4006  ;;  %4026 = vpow2.f32 %v3400_v52  ;;  %v2888_v59 = vmul.f32 %v4005_v56, %v2856_v3  ;;  %v2858_v52 = vadd.f32 %v4985_v25, %v4975_v27  ;;  %v3407_v56 = vmul.f32 -1.442695, %v2382_v54 }
 0x2ca   :  { %v5157_v34 = vpop.f32.mrb[79].mxu0  ;;  %v4009_v10 = vpop.eup %4008  ;;  %v2619_v48 = vadd.f32 1.0, %v4007_v22  ;;  %4028 = vpow2.f32 %v3403_v58  ;;  %v2859_v58 = vadd.f32 %v4992_v2, %v4980_v51  ;;  %v3408_v54 = vmul.f32 -1.442695, %v2383_v17 }
 0x2cb   :  { %v4011_v57 = vpop.eup %4010  ;;  %v2622_v44 = vadd.f32 1.0, %v4009_v10  ;;  %4030 = vpow2.f32 %v3404_v45  ;;  %v2920_v16 = vadd.f32 %v2888_v59, %v4989_v33  ;;  %v2004_v22 = vpop.f32.mrb[16].mxu1  ;;  %v2860_v33 = vadd.f32 %v4985_v25, %v5019_v26  ;;  %v4201_v59 = vld [vmem:[#allocation7 + $0x38] sm:$0xff] }
 0x2cc   :  { %v4013_v29 = vpop.eup %4012  ;;  %4032 = vrcp.f32 %v2619_v48  ;;  %v2623_v3 = vadd.f32 1.0, %v4011_v57  ;;  %v2006_v10 = vpop.f32.mrb[17].mxu1  ;;  %v5171_v27 = vmul.f32 %v4201_v59, %v4918_v18  ;;  %v2862_v26 = vadd.f32 %v4985_v25, %v5033_v49 }
 0x2cd   :  { %v4015_v31 = vpop.eup %4014  ;;  %4034 = vrcp.f32 %v2622_v44  ;;  %v2626_v11 = vadd.f32 1.0, %v4013_v29  ;;  %v2008_v57 = vpop.f32.mrb[18].mxu1  ;;  %v2861_v29 = vadd.f32 %v4992_v2, %v5024_v28  ;;  %v2864_v49 = vadd.f32 %v4985_v25, %v5086_v21 }
 0x2ce   :  { %v4017_v45 = vpop.eup %4016  ;;  %5607 = vst [vmem:[#allocation64_spill] sm:$0xff] %v5171_v27  ;;  %4036 = vrcp.f32 %v2623_v3  ;;  %v2889_v48 = vmul.f32 %v4015_v31, %v2857_v39  ;;  %v5173_v51 = vpop.f32.mrb[80].mxu0  ;;  %v2863_v3 = vadd.f32 %v4992_v2, %v5042_v20 }
 0x2cf   :  { %v4019_v60 = vpop.eup %4018  ;;  %4038 = vrcp.f32 %v2626_v11  ;;  %v2890_v38 = vmul.f32 %v4017_v45, %v2858_v52  ;;  %v2010_v44 = vpop.f32.mrb[19].mxu1 }
 0x2d0   :  { %v5179_v36 = vpop.f32.mrb[81].mxu0  ;;  %v4021_v59 = vpop.eup %4020  ;;  %4040 = vpow2.f32 %v3407_v56  ;;  %v2921_v17 = vadd.f32 %v2889_v48, %v4996_v43  ;;  %v2891_v39 = vmul.f32 %v4019_v60, %v2859_v58  ;;  %v5194_v43 = vadd.f32 %v4992_v2, %v5094_v13 }
 0x2d1   :  { %v5184_v31 = vpop.f32.mrb[82].mxu0  ;;  %v4023_v52 = vpop.eup %4022  ;;  %4042 = vtanh.f32 %v2920_v16  ;;  %v2922_v11 = vadd.f32 %v2890_v38, %v5000_v55  ;;  %v2892_v28 = vmul.f32 %v4021_v59, %v2860_v33  ;;  %v2386_v55 = vadd.f32 %v4940_v61, %v2004_v22 }
 0x2d2   :  { %v5189_v45 = vpop.f32.mrb[83].mxu0  ;;  %v4025_v27 = vpop.eup %4024  ;;  %v2627_v56 = vadd.f32 1.0, %v4023_v52  ;;  %4044 = vpow2.f32 %v3408_v54  ;;  %v2923_v60 = vadd.f32 %v2891_v39, %v5004_v41  ;;  %v2387_v33 = vadd.f32 %v4945_v5, %v2006_v10 }
 0x2d3   :  { %v4027_v20 = vpop.eup %4026  ;;  %v2630_v58 = vadd.f32 1.0, %v4025_v27  ;;  %4046 = vtanh.f32 %v2921_v17  ;;  %v5198_v38 = vadd.f32 %v2892_v28, %v5008_v4  ;;  %v2014_v54 = vpop.f32.mrb[20].mxu1  ;;  %v5203_v41 = vadd.f32 %v4985_v25, %v5101_v30 }
 0x2d4   :  { %v4029_v21 = vpop.eup %4028  ;;  %4048 = vrcp.f32 %v2627_v56  ;;  %v2631_v16 = vadd.f32 1.0, %v4027_v20  ;;  %v2016_v27 = vpop.f32.mrb[21].mxu1  ;;  %v5207_v22 = vadd.f32 %v4992_v2, %v5105_v15  ;;  %v5211_v4 = vadd.f32 %v4985_v25, %v5137_v19 }
 0x2d5   :  { %v4031_v13 = vpop.eup %4030  ;;  %4050 = vrcp.f32 %v2630_v58  ;;  %v2634_v48 = vadd.f32 1.0, %v4029_v21  ;;  %v2390_v17 = vadd.f32 %v4940_v61, %v2008_v57  ;;  %v2018_v39 = vpop.f32.mrb[22].mxu1  ;;  %v5216_v30 = vadd.f32 %v4992_v2, %v5145_v47 }
 0x2d6   :  { %v4033_v59 = vpop.eup %4032  ;;  %4052 = vrcp.f32 %v2631_v16  ;;  %v2635_v10 = vadd.f32 1.0, %v4031_v13  ;;  %v5218_v52 = vpop.f32.mrb[84].mxu0  ;;  %v3411_v15 = vmul.f32 -1.442695, %v2386_v55  ;;  %v2391_v56 = vadd.f32 %v4945_v5, %v2010_v44 }
 0x2d7   :  { %5608 = vst [vmem:[#allocation65_spill] sm:$0xff] %v5218_v52  ;;  %v4035_v28 = vpop.eup %4034  ;;  %4054 = vrcp.f32 %v2634_v48  ;;  %v2893_v20 = vmul.f32 %v4033_v59, %v2861_v29  ;;  %v5221_v19 = vpop.f32.mrb[23].mxu1  ;;  %v3412_v57 = vmul.f32 -1.442695, %v2387_v33  ;;  %v5227_v47 = vadd.f32 %v4985_v25, %v5151_v8 }
 0x2d8   :  { %v5223_v58 = vpop.f32.mrb[85].mxu0  ;;  %v4037_v21 = vpop.eup %4036  ;;  %4056 = vrcp.f32 %v2635_v10  ;;  %v2894_v16 = vmul.f32 %v4035_v28, %v2862_v26  ;;  %v5234_v29 = vadd.f32 %v4992_v2, %v5157_v34  ;;  %v3415_v26 = vmul.f32 -1.442695, %v2390_v17 }
 0x2d9   :  { %v5229_v13 = vpop.f32.mrb[86].mxu0  ;;  %v4039_v52 = vpop.eup %4038  ;;  %4058 = vtanh.f32 %v2922_v11  ;;  %v2925_v55 = vadd.f32 %v2893_v20, %v5013_v50  ;;  %v2895_v44 = vmul.f32 %v4037_v21, %v2863_v3  ;;  %v5610_v3 = vsub.f32 1.0, %v4857_v12 }
 0x2da   :  { %5609 = vst [vmem:[#allocation66_spill] sm:$0xff] %v5229_v13  ;;  %v5236_v48 = vpop.f32.mrb[87].mxu0  ;;  %v4041_v59 = vpop.eup %4040  ;;  %4060 = vtanh.f32 %v2923_v60  ;;  %v2926_v33 = vadd.f32 %v2894_v16, %v5017_v23  ;;  %v2896_v8 = vmul.f32 %v4039_v52, %v2864_v49  ;;  %v3416_v13 = vmul.f32 -1.442695, %v2391_v56 }
 0x2db   :  { %v4043_v10 = vpop.eup %4042  ;;  %v2638_v28 = vadd.f32 1.0, %v4041_v59  ;;  %4062 = vpow2.f32 %v3411_v15  ;;  %v2927_v11 = vadd.f32 %v2895_v44, %v5030_v37  ;;  %v2394_v34 = vadd.f32 %v4940_v61, %v2014_v54  ;;  %v2024_v60 = vpop.f32.mrb[24].mxu1 }
 0x2dc   :  { %v4045_v50 = vpop.eup %4044  ;;  %v3016_v20 = vmul.f32 %v4043_v10, %v5610_v3  ;;  %4064 = vpow2.f32 %v3412_v57  ;;  %v5244_v21 = vadd.f32 %v2896_v8, %v5039_v42  ;;  %v2395_v49 = vadd.f32 %v4945_v5, %v2016_v27  ;;  %v2026_v37 = vpop.f32.mrb[25].mxu1 }
 0x2dd   :  { %v4047_v17 = vpop.eup %4046  ;;  %4066 = vrcp.f32 %v2638_v28  ;;  %v2639_v23 = vadd.f32 1.0, %v4045_v50  ;;  %v5248_v52 = vadd.f32 %v4940_v61, %v2024_v60  ;;  %v5611_v56 = vsub.f32 1.0, %v4862_v24  ;;  %v2028_v54 = vpop.f32.mrb[26].mxu1 }
 0x2de   :  { %v4049_v15 = vpop.eup %4048  ;;  %v3080_v12 = vadd.f32 %v5083_v0, %v3016_v20  ;;  %4068 = vpow2.f32 %v3415_v26  ;;  %v5254_v42 = vadd.f32 %v4945_v5, %v2026_v37  ;;  %v2398_v44 = vadd.f32 %v4940_v61, %v2018_v39  ;;  %v2030_v8 = vpop.f32.mrb[27].mxu1 }
 0x2df   :  { %v3017_v57 = vmul.f32 %v4047_v17, %v5611_v56  ;;  %v4051_v16 = vpop.eup %4050  ;;  %4070 = vrcp.f32 %v2639_v23  ;;  %v2897_v27 = vmul.f32 %v4049_v15, %v5194_v43  ;;  %v5259_v59 = vadd.f32 %v4940_v61, %v2028_v54 }
 0x2e0   :  { %v4053_v10 = vpop.eup %4052  ;;  %3112 = vst [vmem:[#allocation11] sm:$0xff] %v3080_v12  ;;  %4072 = vtanh.f32 %v5198_v38  ;;  %v3419_v0 = vmul.f32 -1.442695, %v2394_v34  ;;  %v2898_v26 = vmul.f32 %v4051_v16, %v5203_v41  ;;  %v3420_v50 = vmul.f32 -1.442695, %v2395_v49 }
 0x2e1   :  { %v3081_v24 = vadd.f32 %v5091_v62, %v3017_v57  ;;  %v4055_v28 = vpop.eup %4054  ;;  %4074 = vpow2.f32 %v3416_v13  ;;  %v5265_v39 = vadd.f32 %v2897_v27, %v5048_v1  ;;  %v2899_v43 = vmul.f32 %v4053_v10, %v5207_v22  ;;  %v5615_v10 = vld [vmem:[#allocation16_spill] sm:$0xff] }
 0x2e2   :  { %v4057_v3 = vpop.eup %4056  ;;  %4076 = vtanh.f32 %v2925_v55  ;;  %v5269_v20 = vadd.f32 %v2898_v26, %v5052_v14  ;;  %v2900_v62 = vmul.f32 %v4055_v28, %v5211_v4  ;;  %v5273_v38 = vadd.f32 %v4945_v5, %v2030_v8  ;;  %v2034_v17 = vpop.f32.mrb[28].mxu1  ;;  %v5616_v28 = vld [vmem:[#allocation17_spill] sm:$0xff] }
 0x2e3   :  { %3113 = vst [vmem:[#allocation11 + $0x8] sm:$0xff] %v3081_v24  ;;  %v4059_v41 = vpop.eup %4058  ;;  %4078 = vtanh.f32 %v2926_v33  ;;  %v3423_v13 = vmul.f32 -1.442695, %v2398_v44  ;;  %v5276_v34 = vadd.f32 %v2899_v43, %v5056_v6  ;;  %v2901_v1 = vmul.f32 %v4057_v3, %v5216_v30 }
 0x2e4   :  { %v4061_v22 = vpop.eup %4060  ;;  %v5612_v60 = vsub.f32 1.0, %v4865_v35  ;;  %4080 = vtanh.f32 %v2927_v11  ;;  %v2399_v14 = vadd.f32 %v4945_v5, %v5221_v19  ;;  %v5284_v4 = vadd.f32 %v2900_v62, %v5060_v7  ;;  %v2036_v35 = vpop.f32.mrb[29].mxu1  ;;  %v5618_v62 = vld [vmem:[#allocation26_spill] sm:$0xff] }
 0x2e5   :  { %v4063_v23 = vpop.eup %4062  ;;  %v5613_v33 = vsub.f32 1.0, %v4870_v40  ;;  %4082 = vpow2.f32 %v3419_v0  ;;  %v5289_v6 = vadd.f32 %v2901_v1, %v5064_v63  ;;  %v5292_v30 = vadd.f32 %v4940_v61, %v2034_v17  ;;  %v2038_v15 = vpop.f32.mrb[30].mxu1  ;;  %v5614_v63 = vld [vmem:[#allocation52_spill] sm:$0xff]  ;;  %v5622_v17 = vld [vmem:[#allocation49_spill] sm:$0xff] }
 0x2e6   :  { %v3018_v55 = vmul.f32 %v4059_v41, %v5612_v60  ;;  %v4065_v11 = vpop.eup %4064  ;;  %v2642_v19 = vadd.f32 1.0, %v4063_v23  ;;  %4084 = vpow2.f32 %v3420_v50  ;;  %v5296_v7 = vadd.f32 %v4945_v5, %v2036_v35  ;;  %v2040_v54 = vpop.f32.mrb[31].mxu1  ;;  %v5624_v35 = vld [vmem:[#allocation20_spill] sm:$0xff] }
 0x2e7   :  { %v3019_v49 = vmul.f32 %v4061_v22, %v5613_v33  ;;  %v4067_v12 = vpop.eup %4066  ;;  %v5300_v40 = vadd.f32 %v4898_v9, %v4868_v53  ;;  %v2643_v57 = vadd.f32 1.0, %v4065_v11  ;;  %4086 = vpow2.f32 %v3423_v13  ;;  %v5619_v13 = vld [vmem:[#allocation19_spill] sm:$0xff] }
 0x2e8   :  { %v3082_v37 = vadd.f32 %v5098_v32, %v3018_v55  ;;  %v4069_v16 = vpop.eup %4068  ;;  %4088 = vrcp.f32 %v2642_v19  ;;  %v3424_v32 = vmul.f32 -1.442695, %v2399_v14  ;;  %v2902_v44 = vmul.f32 %v4067_v12, %v5227_v47  ;;  %v4202_v55 = vld [vmem:[#allocation7 + $0x40] sm:$0xff] }
 0x2e9   :  { %v3083_v56 = vadd.f32 %v5614_v63, %v3019_v49  ;;  %v5305_v27 = vadd.f32 %v4940_v61, %v2038_v15  ;;  %v4071_v8 = vpop.eup %4070  ;;  %v5309_v24 = vadd.f32 %v4901_v46, %v5615_v10  ;;  %4090 = vrcp.f32 %v2643_v57  ;;  %v5617_v61 = vld [vmem:[#allocation47_spill] sm:$0xff]  ;;  %v5623_v49 = vld [vmem:[#allocation61_spill] sm:$0xff] }
 0x2ea   :  { %3114 = vst [vmem:[#allocation11 + $0x10] sm:$0xff] %v3082_v37  ;;  %v2646_v53 = vadd.f32 1.0, %v4069_v16  ;;  %v5312_v0 = vadd.f32 %v4945_v5, %v2040_v54  ;;  %v4073_v26 = vpop.eup %4072  ;;  %v5316_v50 = vadd.f32 %v4898_v9, %v5616_v28  ;;  %4092 = vtanh.f32 %v5244_v21  ;;  %v5620_v5 = vld [vmem:[#allocation18_spill] sm:$0xff]  ;;  %v5336_v23 = vpop.f32.mrb[64].mxu1  ;;  %v5626_v63 = vld [vmem:[#allocation27_spill] sm:$0xff]  ;;  %v4203_v57 = vld [vmem:[#allocation7 + $0x48] sm:$0xff] }
 0x2eb   :  { %3115 = vst [vmem:[#allocation11 + $0x18] sm:$0xff] %v3083_v56  ;;  %v5320_v47 = vadd.f32 %v2902_v44, %v5617_v61  ;;  %v2903_v43 = vmul.f32 %v4071_v8, %v5234_v29  ;;  %v4075_v3 = vpop.eup %4074  ;;  %v2992_v41 = vsub.f32 1.0, %v5618_v62  ;;  %v5326_v1 = vadd.f32 %v4901_v46, %v5619_v13  ;;  %v5343_v15 = vpop.f32.mrb[65].mxu1  ;;  %v5627_v16 = vld [vmem:[#allocation21_spill] sm:$0xff] }
 0x2ec   :  { %4094 = vrcp.f32 %v2646_v53  ;;  %v5621_v22 = vsub.f32 1.0, %v5620_v5  ;;  %v4077_v9 = vpop.eup %4076  ;;  %v5331_v21 = vmul.f32 %v4202_v55, %v5618_v62  ;;  %v2647_v14 = vadd.f32 1.0, %v4075_v3  ;;  %v5351_v8 = vpop.f32.mrb[66].mxu1  ;;  %v5631_v3 = vld [vmem:[#allocation63_spill] sm:$0xff] }
 0x2ed   :  { %4096 = vpow2.f32 %v3424_v32  ;;  %v5334_v29 = vadd.f32 %v2903_v43, %v5622_v17  ;;  %v4079_v33 = vpop.eup %4078  ;;  %v5625_v11 = vsub.f32 1.0, %v5624_v35  ;;  %v3427_v19 = vmul.f32 -1.442695, %v5248_v52  ;;  %v5359_v61 = vpop.f32.mrb[67].mxu1 }
 0x2ee   :  { %v3020_v60 = vmul.f32 %v4073_v26, %v5621_v22  ;;  %4098 = vtanh.f32 %v5265_v39  ;;  %v4081_v12 = vpop.eup %4080  ;;  %v2993_v56 = vsub.f32 1.0, %v5626_v63  ;;  %v5347_v54 = vmul.f32 %v4203_v57, %v5626_v63  ;;  %v5629_v39 = vld [vmem:[#allocation62_spill] sm:$0xff] }
 0x2ef   :  { %v3021_v37 = vmul.f32 %v4077_v9, %v5625_v11  ;;  %4100 = vrcp.f32 %v2647_v14  ;;  %v5628_v32 = vsub.f32 1.0, %v5627_v16  ;;  %v4083_v10 = vpop.eup %4082  ;;  %v5630_v52 = vsub.f32 1.0, %v4918_v18  ;;  %v5632_v18 = vld [vmem:[#allocation64_spill] sm:$0xff]  ;;  %v5635_v16 = vld [vmem:[#allocation53_spill] sm:$0xff] }
 0x2f0   :  { %v3084_v46 = vadd.f32 %v5623_v49, %v3020_v60  ;;  %4102 = vtanh.f32 %v5269_v20  ;;  %v2872_v28 = vadd.f32 %v4985_v25, %v5173_v51  ;;  %v4085_v43 = vpop.eup %4084  ;;  %v2650_v13 = vadd.f32 1.0, %v4083_v10  ;;  %v4204_v49 = vld [vmem:[#allocation7 + $0x50] sm:$0xff] }
 0x2f1   :  { %v3022_v44 = vmul.f32 %v4079_v33, %v5628_v32  ;;  %v3085_v53 = vadd.f32 %v5629_v39, %v3021_v37  ;;  %v3023_v26 = vmul.f32 %v4081_v12, %v5630_v52  ;;  %4104 = vtanh.f32 %v5276_v34  ;;  %v4087_v22 = vpop.eup %4086  ;;  %v5633_v33 = vld [vmem:[#allocation28_spill] sm:$0xff] }
 0x2f2   :  { %3116 = vst [vmem:[#allocation11 + $0x20] sm:$0xff] %v3084_v46  ;;  %v2873_v5 = vadd.f32 %v4992_v2, %v5179_v36  ;;  %v2651_v9 = vadd.f32 1.0, %v4085_v43  ;;  %4106 = vpow2.f32 %v3427_v19  ;;  %v3428_v20 = vmul.f32 -1.442695, %v5254_v42  ;;  %v4089_v51 = vpop.eup %4088  ;;  %v5634_v42 = vld [vmem:[#allocation32_spill] sm:$0xff] }
 0x2f3   :  { %v3086_v62 = vadd.f32 %v5631_v3, %v3022_v44  ;;  %3117 = vst [vmem:[#allocation11 + $0x28] sm:$0xff] %v3085_v53  ;;  %v3087_v60 = vadd.f32 %v5632_v18, %v3023_v26  ;;  %4108 = vrcp.f32 %v2650_v13  ;;  %v2654_v55 = vadd.f32 1.0, %v4087_v22  ;;  %v4091_v17 = vpop.eup %4090  ;;  %v4205_v53 = vld [vmem:[#allocation7 + $0x58] sm:$0xff]  ;;  %v5637_v3 = vld [vmem:[#allocation34_spill] sm:$0xff] }
 0x2f4   :  { %v3431_v14 = vmul.f32 -1.442695, %v5259_v59  ;;  %v2874_v34 = vadd.f32 %v4985_v25, %v5184_v31  ;;  %v2994_v36 = vsub.f32 1.0, %v5633_v33  ;;  %v3058_v46 = vmul.f32 %v4204_v49, %v5633_v33  ;;  %v4093_v11 = vpop.eup %4092  ;;  %v5374_v59 = vpop.f32.mrb[68].mxu1 }
 0x2f5   :  { %3118 = vst [vmem:[#allocation11 + $0x30] sm:$0xff] %v3086_v62  ;;  %3119 = vst [vmem:[#allocation11 + $0x38] sm:$0xff] %v3087_v60  ;;  %4110 = vrcp.f32 %v2651_v9  ;;  %v2904_v35 = vmul.f32 %v4089_v51, %v2872_v28  ;;  %v2995_v37 = vsub.f32 1.0, %v5634_v42  ;;  %v3432_v19 = vmul.f32 -1.442695, %v5273_v38  ;;  %v5381_v10 = vpop.f32.mrb[69].mxu1 }
 0x2f6   :  { %4112 = vrcp.f32 %v2654_v55  ;;  %v2905_v12 = vmul.f32 %v4091_v17, %v2873_v5  ;;  %v4095_v57 = vpop.eup %4094  ;;  %v3024_v31 = vmul.f32 %v4093_v11, %v2992_v41  ;;  %v2875_v44 = vadd.f32 %v4992_v2, %v5189_v45  ;;  %v5636_v38 = vld [vmem:[#allocation54_spill] sm:$0xff]  ;;  %v5387_v43 = vpop.f32.mrb[70].mxu1  ;;  %v5638_v60 = vld [vmem:[#allocation56_spill] sm:$0xff] }
 0x2f7   :  { %4114 = vpow2.f32 %v3428_v20  ;;  %v5377_v32 = vadd.f32 %v2904_v35, %v5635_v16  ;;  %v4097_v39 = vpop.eup %4096  ;;  %v3059_v52 = vmul.f32 %v4205_v53, %v5634_v42  ;;  %v2906_v28 = vmul.f32 %v4095_v57, %v2874_v34  ;;  %v5392_v45 = vpop.f32.mrb[71].mxu1  ;;  %v5639_v20 = vld [vmem:[#allocation65_spill] sm:$0xff]  ;;  %v5640_v17 = vld [vmem:[#allocation66_spill] sm:$0xff] }
 0x2f8   :  { %4116 = vpow2.f32 %v3431_v14  ;;  %v5385_v26 = vadd.f32 %v2905_v12, %v5636_v38  ;;  %v4099_v41 = vpop.eup %4098  ;;  %v2996_v62 = vsub.f32 1.0, %v5637_v3  ;;  %v3088_v13 = vadd.f32 %v5331_v21, %v3024_v31 }
 0x2f9   :  { %v2655_v5 = vadd.f32 1.0, %v4097_v39  ;;  %4118 = vtanh.f32 %v5284_v4  ;;  %v4101_v22 = vpop.eup %4100  ;;  %v3025_v18 = vmul.f32 %v4099_v41, %v2993_v56  ;;  %v5397_v9 = vadd.f32 %v2906_v28, %v5638_v60 }
 0x2fa   :  { %4120 = vpow2.f32 %v3432_v19  ;;  %v2876_v51 = vadd.f32 %v4985_v25, %v5639_v20  ;;  %v4103_v55 = vpop.eup %4102  ;;  %3120 = vst [vmem:[#allocation11 + $0x40] sm:$0xff] %v3088_v13  ;;  %v3435_v21 = vmul.f32 -1.442695, %v5292_v30  ;;  %v2907_v14 = vmul.f32 %v4101_v22, %v2875_v44  ;;  %v5641_v30 = vld [vmem:[#allocation59_spill] sm:$0xff]  ;;  %v4207_v44 = vld [vmem:[#allocation7 + $0x68] sm:$0xff]  ;;  %v5643_v22 = vld [vmem:[#allocation36_spill] sm:$0xff] }
 0x2fb   :  { %4122 = vrcp.f32 %v2655_v5  ;;  %v2877_v4 = vadd.f32 %v4992_v2, %v5223_v58  ;;  %v4105_v34 = vpop.eup %4104  ;;  %v3089_v63 = vadd.f32 %v5347_v54, %v3025_v18  ;;  %v3026_v56 = vmul.f32 %v4103_v55, %v2994_v36  ;;  %v4206_v36 = vld [vmem:[#allocation7 + $0x60] sm:$0xff]  ;;  %v5644_v55 = vld [vmem:[#allocation37_spill] sm:$0xff] }
 0x2fc   :  { %4124 = vtanh.f32 %v5289_v6  ;;  %v2878_v33 = vadd.f32 %v4985_v25, %v5640_v17  ;;  %v4107_v49 = vpop.eup %4106  ;;  %v3027_v35 = vmul.f32 %v4105_v34, %v2995_v37  ;;  %v3436_v11 = vmul.f32 -1.442695, %v5296_v7  ;;  %v5642_v7 = vld [vmem:[#allocation35_spill] sm:$0xff]  ;;  %v5645_v34 = vld [vmem:[#allocation38_spill] sm:$0xff] }
 0x2fd   :  { %4126 = vtanh.f32 %v5320_v47  ;;  %v5411_v42 = vadd.f32 %v2907_v14, %v5641_v30  ;;  %v4109_v19 = vpop.eup %4108  ;;  %3121 = vst [vmem:[#allocation11 + $0x48] sm:$0xff] %v3089_v63  ;;  %v3090_v58 = vadd.f32 %v3058_v46, %v3026_v56  ;;  %v2658_v12 = vadd.f32 1.0, %v4107_v49  ;;  %v4209_v14 = vld [vmem:[#allocation7 + $0x78] sm:$0xff]  ;;  %v4210_v56 = vld [vmem:[#allocation7 + $0x80] sm:$0xff] }
 0x2fe   :  { %4128 = vtanh.f32 %v5334_v29  ;;  %v3439_v6 = vmul.f32 -1.442695, %v5305_v27  ;;  %v3060_v57 = vmul.f32 %v4206_v36, %v5637_v3  ;;  %v3091_v37 = vadd.f32 %v3059_v52, %v3027_v35 }
 0x2ff   :  { %v4111_v54 = vpop.eup %4110  ;;  %4130 = vpow2.f32 %v3435_v21  ;;  %v2908_v47 = vmul.f32 %v4109_v19, %v2876_v51  ;;  %v2997_v16 = vsub.f32 1.0, %v5642_v7  ;;  %v3061_v39 = vmul.f32 %v4207_v44, %v5642_v7  ;;  %3122 = vst [vmem:[#allocation11 + $0x50] sm:$0xff] %v3090_v58  ;;  %v4208_v51 = vld [vmem:[#allocation7 + $0x70] sm:$0xff]  ;;  %v4211_v58 = vld [vmem:[#allocation7 + $0x88] sm:$0xff] }
 0x300   :  { %v4113_v31 = vpop.eup %4112  ;;  %4132 = vrcp.f32 %v2658_v12  ;;  %v2909_v46 = vmul.f32 %v4111_v54, %v2877_v4  ;;  %3123 = vst [vmem:[#allocation11 + $0x58] sm:$0xff] %v3091_v37  ;;  %v2879_v52 = vadd.f32 %v4992_v2, %v5236_v48  ;;  %v3440_v41 = vmul.f32 -1.442695, %v5312_v0 }
 0x301   :  { %v4115_v53 = vpop.eup %4114  ;;  %4134 = vpow2.f32 %v3436_v11  ;;  %v2940_v27 = vadd.f32 %v2908_v47, %v5300_v40  ;;  %v2910_v29 = vmul.f32 %v4113_v31, %v2878_v33  ;;  %v2998_v18 = vsub.f32 1.0, %v5643_v22  ;;  %v5646_v11 = vld [vmem:[#allocation39_spill] sm:$0xff] }
 0x302   :  { %v4117_v38 = vpop.eup %4116  ;;  %v2659_v28 = vadd.f32 1.0, %v4115_v53  ;;  %4136 = vpow2.f32 %v3439_v6  ;;  %v5423_v13 = vadd.f32 %v2909_v46, %v5309_v24  ;;  %v3062_v48 = vmul.f32 %v4208_v51, %v5643_v22 }
 0x303   :  { %v4119_v5 = vpop.eup %4118  ;;  %v2662_v60 = vadd.f32 1.0, %v4117_v38  ;;  %4138 = vtanh.f32 %v5377_v32  ;;  %v5428_v40 = vadd.f32 %v2910_v29, %v5316_v50  ;;  %v2999_v21 = vsub.f32 1.0, %v5644_v55  ;;  %v4213_v38 = vld [vmem:[#allocation7 + $0x98] sm:$0xff] }
 0x304   :  { %v4121_v20 = vpop.eup %4120  ;;  %4140 = vrcp.f32 %v2659_v28  ;;  %v3028_v24 = vmul.f32 %v4119_v5, %v2996_v62  ;;  %v3063_v4 = vmul.f32 %v4209_v14, %v5644_v55  ;;  %v3000_v63 = vsub.f32 1.0, %v5645_v34  ;;  %v4215_v14 = vld [vmem:[#allocation7 + $0xa8] sm:$0xff] }
 0x305   :  { %v4123_v0 = vpop.eup %4122  ;;  %4142 = vrcp.f32 %v2662_v60  ;;  %v2663_v32 = vadd.f32 1.0, %v4121_v20  ;;  %v3064_v17 = vmul.f32 %v4210_v56, %v5645_v34  ;;  %v3001_v30 = vsub.f32 1.0, %v5646_v11  ;;  %v4214_v20 = vld [vmem:[#allocation7 + $0xa0] sm:$0xff] }
 0x306   :  { %v4125_v50 = vpop.eup %4124  ;;  %v3092_v33 = vadd.f32 %v3060_v57, %v3028_v24  ;;  %4144 = vpow2.f32 %v3440_v41  ;;  %v2911_v49 = vmul.f32 %v4123_v0, %v2879_v52  ;;  %v2880_v62 = vadd.f32 %v4985_v25, %v5336_v23  ;;  %v5647_v57 = vld [vmem:[#allocation40_spill] sm:$0xff]  ;;  %v4212_v23 = vld [vmem:[#allocation7 + $0x90] sm:$0xff]  ;;  %v5648_v52 = vld [vmem:[#allocation41_spill] sm:$0xff] }
 0x307   :  { %v4127_v35 = vpop.eup %4126  ;;  %4146 = vrcp.f32 %v2663_v32  ;;  %v3029_v3 = vmul.f32 %v4125_v50, %v2997_v16  ;;  %v5441_v12 = vmul.f32 %v4211_v58, %v5646_v11  ;;  %v3002_v37 = vsub.f32 1.0, %v5647_v57  ;;  %v5651_v24 = vld [vmem:[#allocation43_spill] sm:$0xff] }
 0x308   :  { %v4129_v19 = vpop.eup %4128  ;;  %3124 = vst [vmem:[#allocation11 + $0x60] sm:$0xff] %v3092_v33  ;;  %v3030_v6 = vmul.f32 %v4127_v35, %v2998_v18  ;;  %4148 = vtanh.f32 %v5385_v26  ;;  %v2943_v54 = vadd.f32 %v2911_v49, %v5326_v1  ;;  %v5448_v16 = vmul.f32 %v4212_v23, %v5647_v57  ;;  %v5652_v33 = vld [vmem:[#allocation44_spill] sm:$0xff]  ;;  %v5653_v35 = vld [vmem:[#allocation23_spill] sm:$0xff] }
 0x309   :  { %v4131_v36 = vpop.eup %4130  ;;  %v3093_v47 = vadd.f32 %v3061_v39, %v3029_v3  ;;  %v3031_v31 = vmul.f32 %v4129_v19, %v2999_v21  ;;  %4150 = vtanh.f32 %v5397_v9  ;;  %v2881_v39 = vadd.f32 %v4992_v2, %v5343_v15  ;;  %v4216_v19 = vld [vmem:[#allocation7 + $0xb0] sm:$0xff]  ;;  %v5656_v23 = vld [vmem:[#allocation48_spill] sm:$0xff] }
 0x30a   :  { %v4133_v7 = vpop.eup %4132  ;;  %v3094_v44 = vadd.f32 %v3062_v48, %v3030_v6  ;;  %v2666_v46 = vadd.f32 1.0, %v4131_v36  ;;  %4152 = vtanh.f32 %v5411_v42  ;;  %v3003_v9 = vsub.f32 1.0, %v5648_v52  ;;  %v5649_v42 = vld [vmem:[#allocation42_spill] sm:$0xff] }
 0x30b   :  { %v4135_v53 = vpop.eup %4134  ;;  %3125 = vst [vmem:[#allocation11 + $0x68] sm:$0xff] %v3093_v47  ;;  %v3095_v26 = vadd.f32 %v3063_v4, %v3031_v31  ;;  %4154 = vtanh.f32 %v2940_v27  ;;  %v2912_v1 = vmul.f32 %v4133_v7, %v2880_v62  ;;  %v5455_v28 = vmul.f32 %v4213_v38, %v5648_v52  ;;  %v5650_v27 = vld [vmem:[#allocation22_spill] sm:$0xff] }
 0x30c   :  { %v4137_v29 = vpop.eup %4136  ;;  %3126 = vst [vmem:[#allocation11 + $0x70] sm:$0xff] %v3094_v44  ;;  %4156 = vrcp.f32 %v2666_v46  ;;  %v2667_v41 = vadd.f32 1.0, %v4135_v53  ;;  %v3004_v22 = vsub.f32 1.0, %v5649_v42  ;;  %v3068_v51 = vmul.f32 %v4214_v20, %v5649_v42  ;;  %v5655_v47 = vld [vmem:[#allocation46_spill] sm:$0xff]  ;;  %v5657_v53 = vld [vmem:[#allocation25_spill] sm:$0xff] }
 0x30d   :  { %v4139_v5 = vpop.eup %4138  ;;  %3127 = vst [vmem:[#allocation11 + $0x78] sm:$0xff] %v3095_v26  ;;  %v2670_v18 = vadd.f32 1.0, %v4137_v29  ;;  %4158 = vtanh.f32 %v5423_v13  ;;  %v2944_v60 = vadd.f32 %v2912_v1, %v5650_v27  ;;  %v2882_v55 = vadd.f32 %v4985_v25, %v5351_v8  ;;  %v5658_v52 = vld [vmem:[#allocation50_spill] sm:$0xff] }
 0x30e   :  { %v4141_v15 = vpop.eup %4140  ;;  %4160 = vrcp.f32 %v2667_v41  ;;  %v3032_v48 = vmul.f32 %v4139_v5, %v3000_v63  ;;  %v3005_v0 = vsub.f32 1.0, %v5651_v24  ;;  %v5465_v4 = vmul.f32 %v4215_v14, %v5651_v24  ;;  %v5662_v24 = vld [vmem:[#allocation55_spill] sm:$0xff] }
 0x30f   :  { %v4143_v21 = vpop.eup %4142  ;;  %4162 = vrcp.f32 %v2670_v18  ;;  %v2913_v13 = vmul.f32 %v4141_v15, %v2881_v39  ;;  %v2883_v63 = vadd.f32 %v4992_v2, %v5359_v61  ;;  %v3006_v8 = vsub.f32 1.0, %v5652_v33  ;;  %v5660_v18 = vld [vmem:[#allocation51_spill] sm:$0xff] }
 0x310   :  { %v4145_v34 = vpop.eup %4144  ;;  %v3096_v32 = vadd.f32 %v3064_v17, %v3032_v48  ;;  %4164 = vtanh.f32 %v5428_v40  ;;  %v2914_v50 = vmul.f32 %v4143_v21, %v2882_v55  ;;  %v5473_v58 = vmul.f32 %v4216_v19, %v5652_v33  ;;  %v5654_v17 = vld [vmem:[#allocation24_spill] sm:$0xff]  ;;  %v5661_v48 = vld [vmem:[#allocation29_spill] sm:$0xff]  ;;  %v5664_v33 = vld [vmem:[#allocation31_spill] sm:$0xff] }
 0x311   :  { %v4147_v56 = vpop.eup %4146  ;;  %v2671_v49 = vadd.f32 1.0, %v4145_v34  ;;  %4166 = vtanh.f32 %v2943_v54  ;;  %v2945_v3 = vadd.f32 %v2913_v13, %v5653_v35  ;;  %v2668_v61 = vadd.f32 1.0, %v5655_v47  ;;  %v4218_v34 = vld [vmem:[#allocation7 + $0xc0] sm:$0xff] }
 0x312   :  { %v4149_v62 = vpop.eup %4148  ;;  %3128 = vst [vmem:[#allocation11 + $0x80] sm:$0xff] %v3096_v32  ;;  %4168 = vtanh.f32 %v2944_v60  ;;  %v2946_v40 = vadd.f32 %v2914_v50, %v5654_v17  ;;  %v2915_v6 = vmul.f32 %v4147_v56, %v2883_v63  ;;  %v2884_v54 = vadd.f32 %v4985_v25, %v5374_v59  ;;  %v5663_v32 = vld [vmem:[#allocation30_spill] sm:$0xff] }
 0x313   :  { %v4151_v36 = vpop.eup %4150  ;;  %4170 = vrcp.f32 %v2671_v49  ;;  %v3033_v31 = vmul.f32 %v4149_v62, %v3001_v30  ;;  %v2669_v44 = vadd.f32 1.0, %v5656_v23  ;;  %v2885_v11 = vadd.f32 %v4992_v2, %v5381_v10 }
 0x314   :  { %v4153_v7 = vpop.eup %4152  ;;  %v3034_v46 = vmul.f32 %v4151_v36, %v3002_v37  ;;  %4172 = vtanh.f32 %v2945_v3  ;;  %v2947_v26 = vadd.f32 %v2915_v6, %v5657_v53  ;;  %v2672_v59 = vadd.f32 1.0, %v5658_v52  ;;  %v5659_v37 = vld [vmem:[#allocation45_spill] sm:$0xff] }
 0x315   :  { %v4155_v1 = vpop.eup %4154  ;;  %v3097_v39 = vadd.f32 %v5441_v12, %v3033_v31  ;;  %v3035_v29 = vmul.f32 %v4153_v7, %v3003_v9  ;;  %4174 = vtanh.f32 %v2946_v40  ;;  %v3007_v5 = vsub.f32 1.0, %v5659_v37  ;;  %v5666_v40 = vld [vmem:[#allocation58_spill] sm:$0xff]  ;;  %v4219_v31 = vld [vmem:[#allocation7 + $0xc8] sm:$0xff]  ;;  %v5667_v7 = vld [vmem:[#allocation60_spill] sm:$0xff] }
 0x316   :  { %v4157_v30 = vpop.eup %4156  ;;  %v3098_v38 = vadd.f32 %v5448_v16, %v3034_v46  ;;  %v3036_v41 = vmul.f32 %v4155_v1, %v3004_v22  ;;  %4176 = vtanh.f32 %v2947_v26  ;;  %v2673_v27 = vadd.f32 1.0, %v5660_v18  ;;  %v4217_v22 = vld [vmem:[#allocation7 + $0xb8] sm:$0xff]  ;;  %v4220_v46 = vld [vmem:[#allocation7 + $0xd0] sm:$0xff]  ;;  %v5668_v26 = vld [vmem:[#allocation33_spill] sm:$0xff] }
 0x317   :  { %v4159_v57 = vpop.eup %4158  ;;  %4178 = vrcp.f32 %v2668_v61  ;;  %3129 = vst [vmem:[#allocation11 + $0x88] sm:$0xff] %v3097_v39  ;;  %v3099_v42 = vadd.f32 %v5455_v28, %v3035_v29  ;;  %v2916_v12 = vmul.f32 %v4157_v30, %v2884_v54  ;;  %v2886_v15 = vadd.f32 %v4985_v25, %v5387_v43  ;;  %v4221_v29 = vld [vmem:[#allocation7 + $0xd8] sm:$0xff] }
 0x318   :  { %v4161_v9 = vpop.eup %4160  ;;  %3130 = vst [vmem:[#allocation11 + $0x90] sm:$0xff] %v3098_v38  ;;  %v3100_v10 = vadd.f32 %v3068_v51, %v3036_v41  ;;  %v3037_v60 = vmul.f32 %v4159_v57, %v3005_v0  ;;  %v3071_v20 = vmul.f32 %v4217_v22, %v5659_v37  ;;  %4180 = vrcp.f32 %v2669_v44 }
 0x319   :  { %v4163_v16 = vpop.eup %4162  ;;  %3131 = vst [vmem:[#allocation11 + $0x98] sm:$0xff] %v3099_v42  ;;  %v2948_v55 = vadd.f32 %v2916_v12, %v5661_v48  ;;  %v2917_v21 = vmul.f32 %v4161_v9, %v2885_v11  ;;  %v3008_v14 = vsub.f32 1.0, %v5662_v24  ;;  %4182 = vrcp.f32 %v2672_v59  ;;  %v4222_v12 = vld [vmem:[#allocation7 + $0xe0] sm:$0xff] }
 0x31a   :  { %v4165_v28 = vpop.eup %4164  ;;  %3132 = vst [vmem:[#allocation11 + $0xa0] sm:$0xff] %v3100_v10  ;;  %v3101_v51 = vadd.f32 %v5465_v4, %v3037_v60  ;;  %v2918_v0 = vmul.f32 %v4163_v16, %v2886_v15  ;;  %v3072_v25 = vmul.f32 %v4218_v34, %v5662_v24  ;;  %v2887_v35 = vadd.f32 %v4992_v2, %v5392_v45  ;;  %v5665_v4 = vld [vmem:[#allocation57_spill] sm:$0xff] }
 0x31b   :  { %v4167_v13 = vpop.eup %4166  ;;  %v3038_v43 = vmul.f32 %v4165_v28, %v3006_v8  ;;  %4184 = vtanh.f32 %v2948_v55  ;;  %v2949_v50 = vadd.f32 %v2917_v21, %v5663_v32  ;;  %v3009_v62 = vsub.f32 1.0, %v5665_v4  ;;  %v4223_v16 = vld [vmem:[#allocation7 + $0xe8] sm:$0xff]  ;;  %v4224_v55 = vld [vmem:[#allocation7 + $0xf0] sm:$0xff] }
 0x31c   :  { %v4169_v63 = vpop.eup %4168  ;;  %4186 = vrcp.f32 %v2673_v27  ;;  %3133 = vst [vmem:[#allocation11 + $0xa8] sm:$0xff] %v3101_v51  ;;  %v3039_v56 = vmul.f32 %v4167_v13, %v3007_v5  ;;  %v2950_v49 = vadd.f32 %v2918_v0, %v5664_v33  ;;  %v3010_v6 = vsub.f32 1.0, %v5666_v40  ;;  %v4225_v13 = vld [vmem:[#allocation7 + $0xf8] sm:$0xff] }
 0x31d   :  { %v4171_v3 = vpop.eup %4170  ;;  %v3102_v19 = vadd.f32 %v5473_v58, %v3038_v43  ;;  %v3040_v17 = vmul.f32 %v4169_v63, %v3008_v14  ;;  %4188 = vtanh.f32 %v2949_v50  ;;  %v3073_v54 = vmul.f32 %v4219_v31, %v5665_v4 }
 0x31e   :  { %v4173_v8 = vpop.eup %4172  ;;  %v3103_v36 = vadd.f32 %v3071_v20, %v3039_v56  ;;  %4190 = vtanh.f32 %v2950_v49  ;;  %v2919_v47 = vmul.f32 %v4171_v3, %v2887_v35  ;;  %v3011_v23 = vsub.f32 1.0, %v5667_v7 }
 0x31f   :  { %v4175_v61 = vpop.eup %4174  ;;  %3134 = vst [vmem:[#allocation11 + $0xb0] sm:$0xff] %v3102_v19  ;;  %v3104_v2 = vadd.f32 %v3072_v25, %v3040_v17  ;;  %v3041_v45 = vmul.f32 %v4173_v8, %v3009_v62  ;;  %v3074_v58 = vmul.f32 %v4220_v46, %v5666_v40  ;;  %v3075_v11 = vmul.f32 %v4221_v29, %v5667_v7 }
 0x320   :  { %v4177_v44 = vpop.eup %4176  ;;  %3135 = vst [vmem:[#allocation11 + $0xb8] sm:$0xff] %v3103_v36  ;;  %v3042_v53 = vmul.f32 %v4175_v61, %v3010_v6  ;;  %v2951_v1 = vadd.f32 %v2919_v47, %v5668_v26 }
 0x321   :  { %v4179_v39 = vpop.eup %4178  ;;  %3136 = vst [vmem:[#allocation11 + $0xc0] sm:$0xff] %v3104_v2  ;;  %v3105_v30 = vadd.f32 %v3073_v54, %v3041_v45  ;;  %v3043_v52 = vmul.f32 %v4177_v44, %v3011_v23 }
 0x322   :  { %v3106_v59 = vadd.f32 %v3074_v58, %v3042_v53  ;;  %4192 = vtanh.f32 %v2951_v1  ;;  %v4181_v38 = vpop.eup %4180  ;;  %v3012_v37 = vsub.f32 1.0, %v4179_v39  ;;  %v3076_v9 = vmul.f32 %v4222_v12, %v4179_v39 }
 0x323   :  { %3137 = vst [vmem:[#allocation11 + $0xc8] sm:$0xff] %v3105_v30  ;;  %v3107_v41 = vadd.f32 %v3075_v11, %v3043_v52  ;;  %v4183_v57 = vpop.eup %4182  ;;  %v3013_v18 = vsub.f32 1.0, %v4181_v38  ;;  %v3077_v22 = vmul.f32 %v4223_v16, %v4181_v38 }
 0x324   :  { %3138 = vst [vmem:[#allocation11 + $0xd0] sm:$0xff] %v3106_v59  ;;  %v3014_v60 = vsub.f32 1.0, %v4183_v57  ;;  %v3078_v21 = vmul.f32 %v4224_v55, %v4183_v57 }
 0x325   :  { %v4185_v5 = vpop.eup %4184  ;;  %3139 = vst [vmem:[#allocation11 + $0xd8] sm:$0xff] %v3107_v41 }
 0x326   :  { %v4187_v42 = vpop.eup %4186  ;;  %v3044_v27 = vmul.f32 %v4185_v5, %v3012_v37 }
 0x327   :  { %v4189_v10 = vpop.eup %4188  ;;  %v3015_v14 = vsub.f32 1.0, %v4187_v42  ;;  %v3079_v34 = vmul.f32 %v4225_v13, %v4187_v42 }
 0x328   :  { %v4191_v15 = vpop.eup %4190  ;;  %v3108_v20 = vadd.f32 %v3076_v9, %v3044_v27  ;;  %v3045_v48 = vmul.f32 %v4189_v10, %v3013_v18 }
 0x329   :  { %v3046_v28 = vmul.f32 %v4191_v15, %v3014_v60 }
 0x32a   :  { %3140 = vst [vmem:[#allocation11 + $0xe0] sm:$0xff] %v3108_v20  ;;  %v3109_v24 = vadd.f32 %v3077_v22, %v3045_v48 }
 0x32b   :  { %v3110_v51 = vadd.f32 %v3078_v21, %v3046_v28 }
 0x32c   :  { %v4193_v0 = vpop.eup %4192  ;;  %3141 = vst [vmem:[#allocation11 + $0xe8] sm:$0xff] %v3109_v24 }
 0x32d   :  { %3142 = vst [vmem:[#allocation11 + $0xf0] sm:$0xff] %v3110_v51  ;;  %v3047_v25 = vmul.f32 %v4193_v0, %v3015_v14 }
 0x32f   :  { %v3111_v43 = vadd.f32 %v3079_v34, %v3047_v25 }
 0x331   :  { %3143 = vst [vmem:[#allocation11 + $0xf8] sm:$0xff] %v3111_v43 }
 0x332   :  { %4347 = shalt.err (!%p4344_p2)
}
 0x333   :  { %s4348_s9 = scalar_lea.hbm %s5535_s8, 4096 }
 0x334   :  { %p4349_p3 = scmp.ne.s32.totalorder %s5535_s8, %s4348_s9  ;;  %p4352_p4 = scmp.lt.u32.totalorder %s4348_s9, %s5535_s8 }
 0x336   :  { %p4354_p5 = pnand %p4352_p4, %p4349_p3 }
 0x338   :  { %4357 = shalt.err (!%p4354_p5)
}
 0x339   :  { %3155 = dma.vmem_to_hbm [thread:$0]  %s3150_s26, 4096, %s5535_s8, [#allocation4], %s4376_s0, %s4376_s0, %s4377_s11  }
 0x33a   :  { %4364 = dma.done.wait [#allocation4], 4096  }
 0x33b   :  { %4365 = vsyncadd [#allocation4], 4294963200 }
 0x33c   :  { %3159 = vsyncpa [#allocation3], 1 }
 0x33d   :  { %3160 = vsyncpa [#allocation6], 1 }
 0x33e   :  { %3161 = vsyncpa [#allocation9], 1 }
 0x33f   :  { %3162 = vsyncpa [#allocation4], 1 }

</bundles_post_ra>
